<compile_context>
chip_gen: v7x
topology: tpu7x:2x2x1
jax: 0.10.0
libtpu: 0.0.40
codegen_flags: <defaults>
</compile_context>

<pallas_src>
import functools

import jax
import jax.numpy as jnp
from jax import lax
from jax.experimental import pallas as pl
from jax.experimental.pallas import tpu as pltpu

_VMEM_LIMIT_BYTES = 32 * 1024 * 1024   # safe on v5e/v6e (128 MiB) and v7x (64 MiB)


def _round_up(x, m):
    return ((x + m - 1) // m) * m


# ----------------------------- Pallas kernels ------------------------------ #

def conv_relu_pool_kernel(p_ref, w_ref, b_ref, o_ref, *, tm):
    """Fused conv(3x3,pad=1) + bias + ReLU + maxpool(2x2), one M-tile.

    p_ref: (K, 4*tm) bf16  columns ordered (phase, m_local), K = 9*Cin
    w_ref: (Cout, K) bf16
    b_ref: (Cout, 1) f32
    o_ref: (Cout, tm) bf16  lane-dense output tile
    """
    # One weight-stationary MXU pass covering all 4 pooling phases.
    r = jnp.dot(w_ref[...], p_ref[...], preferred_element_type=jnp.float32)
    # Max-pool = elementwise max over the four lane-aligned tm-wide slices.
    m = jnp.maximum(jnp.maximum(r[:, 0 * tm:1 * tm], r[:, 1 * tm:2 * tm]),
                    jnp.maximum(r[:, 2 * tm:3 * tm], r[:, 3 * tm:4 * tm]))
    # Bias + ReLU once, after the max (ReLU monotone, bias phase-invariant).
    o_ref[...] = jnp.maximum(m + b_ref[...], 0.0).astype(o_ref.dtype)


def fc_head_kernel(x_ref, w1_ref, b1_ref, w2_ref, b2_ref, o_ref):
    """Linear -> ReLU -> Linear -> Softmax(dim=1) on a batch tile.

    x: (tn, F) bf16; w1: (F, H1) bf16; b1: (1, H1) f32;
    w2: (H1, 128) bf16 (zero-padded cols); b2: (1, 128) f32 (-1e30 padding);
    out: (tn, 128) f32 lane-dense (real classes in the first 10 lanes).
    """
    h = jnp.dot(x_ref[...], w1_ref[...],
                preferred_element_type=jnp.float32) + b1_ref[...]
    h = jnp.maximum(h, 0.0).astype(jnp.bfloat16)
    logits = jnp.dot(h, w2_ref[...],
                     preferred_element_type=jnp.float32) + b2_ref[...]
    m = jnp.max(logits, axis=1, keepdims=True)
    e = jnp.exp(logits - m)                     # padded lanes: exp(-1e30-m) == 0
    denom = jnp.sum(e, axis=1, keepdims=True)
    o_ref[...] = e / denom                      # exact divide: rows sum to 1


# ------------------------------ JAX glue code ------------------------------ #

def _im2col_patches(x_cnhw, tm, m_pad):
    """(C,N,H,W) -> (9*C, T*4*tm) bf16 patches, columns ordered (tile, phase, m).

    K rows ordered (kh, kw, cin); pooled positions m ordered (n, hh, wh);
    phase = a*2+b for conv output position (2*hh+a, 2*wh+b); tile = m // tm.
    """
    C, N, H, W = x_cnhw.shape
    Hh, Wh = H // 2, W // 2
    M = N * Hh * Wh
    xp = jnp.pad(x_cnhw, ((0, 0), (0, 0), (1, 1), (1, 1)))
    taps = [xp[:, :, kh:kh + H, kw:kw + W] for kh in range(3) for kw in range(3)]
    p = jnp.stack(taps, axis=0)                       # (9, C, N, H, W)
    p = p.reshape(9, C, N, Hh, 2, Wh, 2)              # H->(hh,a), W->(wh,b)
    p = p.transpose(0, 1, 4, 6, 2, 3, 5)              # (9, C, a, b, N, hh, wh)
    p = p.reshape(9 * C, 4, M)                        # (K, phase, m)
    if m_pad != M:
        p = jnp.pad(p, ((0, 0), (0, 0), (0, m_pad - M)))
    T = m_pad // tm
    p = p.reshape(9 * C, 4, T, tm).transpose(0, 2, 1, 3)   # (K, T, phase, tm)
    return p.reshape(9 * C, T * 4 * tm)


def conv_relu_pool(x_cnhw, w_oihw, b, *, tm_max=2048):
    """One conv block.  Input/output layout: (C, N, H, W); output dtype bf16."""
    C, N, H, W = x_cnhw.shape
    Cout = w_oihw.shape[0]
    Hh, Wh = H // 2, W // 2
    M = N * Hh * Wh
    K = 9 * C

    m128 = _round_up(M, 128)
    tm = min(tm_max, m128)
    if m128 >= 256:                       # guarantee >=2 grid steps (megacore/pipelining)
        tm = min(tm, max(128, (m128 // 2) // 128 * 128))
    m_pad = _round_up(M, tm)

    patches = _im2col_patches(x_cnhw.astype(jnp.bfloat16), tm, m_pad)
    # torch conv weight (Cout, Cin, 3, 3) -> (Cout, K) with K ordered (kh, kw, cin)
    w_mat = jnp.transpose(w_oihw, (0, 2, 3, 1)).reshape(Cout, K).astype(jnp.bfloat16)

    out = pl.pallas_call(
        functools.partial(conv_relu_pool_kernel, tm=tm),
        out_shape=jax.ShapeDtypeStruct((Cout, m_pad), jnp.bfloat16),
        grid=(m_pad // tm,),
        in_specs=[
            pl.BlockSpec((K, 4 * tm), lambda i: (0, i)),    # pipelined over M
            pl.BlockSpec((Cout, K), lambda i: (0, 0)),      # resident weight
            pl.BlockSpec((Cout, 1), lambda i: (0, 0)),      # resident bias (f32)
        ],
        out_specs=pl.BlockSpec((Cout, tm), lambda i: (0, i)),
        compiler_params=pltpu.CompilerParams(
            dimension_semantics=("parallel",),              # megacore on v7x
            vmem_limit_bytes=_VMEM_LIMIT_BYTES),
    )(patches, w_mat, b.reshape(Cout, 1).astype(jnp.float32))

    # Padded columns contain relu(bias) garbage -> must slice before reuse.
    return out[:, :M].reshape(Cout, N, Hh, Wh)


def fc_head(feat, w1, b1, w2, b2, *, tn_max=256):
    N, F = feat.shape
    H1 = w1.shape[1]
    O = w2.shape[1]
    Opad = _round_up(O, 128)              # lane-dense output -> unmasked stores

    n8 = _round_up(N, 8)
    tn = min(tn_max, n8)
    if n8 >= 16:                          # >=2 grid steps over batch when possible
        tn = min(tn, max(8, (n8 // 2) // 8 * 8))
    n_pad = _round_up(N, tn)
    if n_pad != N:
        feat = jnp.pad(feat, ((0, n_pad - N), (0, 0)))

    w2p = jnp.pad(w2, ((0, 0), (0, Opad - O)))                        # zero cols
    b2p = jnp.pad(b2, (0, Opad - O), constant_values=-1e30)           # exp -> 0

    out = pl.pallas_call(
        fc_head_kernel,
        out_shape=jax.ShapeDtypeStruct((n_pad, Opad), jnp.float32),
        grid=(n_pad // tn,),
        in_specs=[
            pl.BlockSpec((tn, F), lambda i: (i, 0)),        # pipelined over batch
            pl.BlockSpec((F, H1), lambda i: (0, 0)),        # resident weights
            pl.BlockSpec((1, H1), lambda i: (0, 0)),
            pl.BlockSpec((H1, Opad), lambda i: (0, 0)),
            pl.BlockSpec((1, Opad), lambda i: (0, 0)),
        ],
        out_specs=pl.BlockSpec((tn, Opad), lambda i: (i, 0)),
        compiler_params=pltpu.CompilerParams(
            dimension_semantics=("parallel",),
            vmem_limit_bytes=_VMEM_LIMIT_BYTES),
    )(feat.astype(jnp.bfloat16), w1.astype(jnp.bfloat16),
      b1.reshape(1, H1).astype(jnp.float32),
      w2p.astype(jnp.bfloat16), b2p.reshape(1, Opad).astype(jnp.float32))
    return out[:N, :O]


def net_forward(x_nchw, params):
    """x_nchw: (N, 3, H, W) float32, same convention as the PyTorch module."""
    x = jnp.transpose(x_nchw, (1, 0, 2, 3))                  # NCHW -> CNHW
    x = conv_relu_pool(x, params["w_c1"], params["b_c1"], tm_max=4096)   # K=27
    x = conv_relu_pool(x, params["w_c2"], params["b_c2"], tm_max=2048)   # K=288
    x = conv_relu_pool(x, params["w_c3"], params["b_c3"], tm_max=2048)   # K=288
    C, N, Hh, Wh = x.shape
    # torch flattens NCHW: feature index = c*(Hh*Wh) + i*Wh + j  (tiny tensor)
    feat = jnp.transpose(x, (1, 0, 2, 3)).reshape(N, C * Hh * Wh)
    return fc_head(feat, params["w_fc1"], params["b_fc1"],
                   params["w_fc2"], params["b_fc2"])


# -------------------------- deterministic parameters ------------------------ #

def init_params(key, height, width):
    ks = jax.random.split(key, 10)

    def nrm(k, shape, scale):
        return (scale * jax.random.normal(k, shape)).astype(jnp.float32)

    f = 24 * (height // 8) * (width // 8)
    return {
        "w_c1": nrm(ks[0], (32, 3, 3, 3), 0.10),   # torch Conv2d weight (Cout,Cin,3,3)
        "b_c1": nrm(ks[1], (32,), 0.10),
        "w_c2": nrm(ks[2], (32, 32, 3, 3), 0.05),
        "b_c2": nrm(ks[3], (32,), 0.05),
        "w_c3": nrm(ks[4], (24, 32, 3, 3), 0.05),
        "b_c3": nrm(ks[5], (24,), 0.05),
        "w_fc1": nrm(ks[6], (f, 512), 0.05),       # stored transposed: y = x @ w + b
        "b_fc1": nrm(ks[7], (512,), 0.05),
        "w_fc2": nrm(ks[8], (512, 10), 0.05),
        "b_fc2": nrm(ks[9], (10,), 0.05),
    }


# ------------------------------ pure-JAX reference -------------------------- #

def net_reference(x_nchw, params, *, mirror_bf16=False):
    """Torch-semantics reference.  With mirror_bf16=True it rounds inputs /
    weights / inter-layer activations to bf16 at the same points as the Pallas
    path (accumulation stays f32), so it tracks the kernel tightly."""
    hp = lax.Precision.HIGHEST
    cast = ((lambda a: a.astype(jnp.bfloat16).astype(jnp.float32))
            if mirror_bf16 else (lambda a: a))

    def conv_block(x, w, b):
        y = lax.conv_general_dilated(
            cast(x), cast(w), (1, 1), "SAME",
            dimension_numbers=("NCHW", "OIHW", "NCHW"), precision=hp)
        y = jnp.maximum(y + b[None, :, None, None], 0.0)
        y = lax.reduce_window(y, -jnp.inf, lax.max,
                              (1, 1, 2, 2), (1, 1, 2, 2), "VALID")
        return cast(y)

    y = conv_block(x_nchw, params["w_c1"], params["b_c1"])
    y = conv_block(y, params["w_c2"], params["b_c2"])
    y = conv_block(y, params["w_c3"], params["b_c3"])
    feat = y.reshape(y.shape[0], -1)
    h = jnp.maximum(
        jnp.dot(cast(feat), cast(params["w_fc1"]), precision=hp) + params["b_fc1"], 0.0)
    h = cast(h)
    logits = jnp.dot(h, cast(params["w_fc2"]), precision=hp) + params["b_fc2"]
    return jax.nn.softmax(logits, axis=1)


# ----------------------------------- main ----------------------------------- #

if __name__ == "__main__":
    key = jax.random.PRNGKey(0)
    kx, kp = jax.random.split(key)

    N, H, W = 2, 16, 16                        # small but consistent with Net(H, W)
    x = jax.random.normal(kx, (N, 3, H, W), dtype=jnp.float32)
    params = init_params(kp, H, W)

    fwd = jax.jit(net_forward)
    out = jax.block_until_ready(fwd(x, params))

    ref_bf = jax.block_until_ready(net_reference(x, params, mirror_bf16=True))
    ref_fp = jax.block_until_ready(net_reference(x, params, mirror_bf16=False))

    assert out.shape == (N, 10), out.shape
    assert bool(jnp.all(jnp.isfinite(out)))
    assert bool(jnp.allclose(jnp.sum(out, axis=1), 1.0, atol=1e-3))
    # Tight check vs bf16-rounding-matched reference; loose check vs pure-f32.
    assert bool(jnp.allclose(out, ref_bf, atol=5e-3, rtol=5e-3))
    assert bool(jnp.allclose(out, ref_fp, atol=2e-2, rtol=2e-2))
    print("KERNEL_OK")
</pallas_src>

<mosaic_0001>
module attributes {stable_mosaic.version = 11 : i64} {
  func.func @conv_relu_pool_kernel(%arg0: i32, %arg1: memref<27x512xbf16, #tpu.memory_space<vmem>>, %arg2: memref<32x27xbf16, #tpu.memory_space<vmem>>, %arg3: memref<32x1xf32, #tpu.memory_space<vmem>>, %arg4: memref<32x128xbf16, #tpu.memory_space<vmem>>) attributes {dimension_semantics = [#tpu.dimension_semantics<parallel>], iteration_bounds = array<i64: 1>, scalar_prefetch = 0 : i64, scratch_operands = 0 : i64, tpu.core_type = #tpu.core_type<tc>, window_params = [{transform_indices = @transform_0, window_bounds = array<i64: 27, 512>}, {pipeline_mode = #tpu.pipeline_mode<synchronous>, transform_indices = @transform_1, window_bounds = array<i64: 32, 27>}, {pipeline_mode = #tpu.pipeline_mode<synchronous>, transform_indices = @transform_2, window_bounds = array<i64: 32, 1>}, {transform_indices = @transform_3, window_bounds = array<i64: 32, 128>}]} {
    %c0 = arith.constant 0 : index
    %c0_0 = arith.constant 0 : index
    %0 = vector.load %arg2[%c0, %c0_0] : memref<32x27xbf16, #tpu.memory_space<vmem>>, vector<32x27xbf16>
    %c0_1 = arith.constant 0 : index
    %c0_2 = arith.constant 0 : index
    %1 = vector.load %arg1[%c0_1, %c0_2] : memref<27x512xbf16, #tpu.memory_space<vmem>>, vector<27x512xbf16>
    %cst = arith.constant dense<0.000000e+00> : vector<32x512xf32>
    %2 = tpu.matmul %0, %1, %cst {dimension_numbers = #tpu.dot_dimension_numbers<[1], [0], [0], [1], [0, 0, 1, 1], [], []>} : vector<32x27xbf16>, vector<27x512xbf16>, vector<32x512xf32> -> vector<32x512xf32>
    %3 = vector.extract_strided_slice %2 {offsets = [0, 0], sizes = [32, 128], strides = [1, 1]} : vector<32x512xf32> to vector<32x128xf32>
    %4 = vector.extract_strided_slice %2 {offsets = [0, 128], sizes = [32, 128], strides = [1, 1]} : vector<32x512xf32> to vector<32x128xf32>
    %5 = arith.maximumf %3, %4 : vector<32x128xf32>
    %6 = vector.extract_strided_slice %2 {offsets = [0, 256], sizes = [32, 128], strides = [1, 1]} : vector<32x512xf32> to vector<32x128xf32>
    %7 = vector.extract_strided_slice %2 {offsets = [0, 384], sizes = [32, 128], strides = [1, 1]} : vector<32x512xf32> to vector<32x128xf32>
    %8 = arith.maximumf %6, %7 : vector<32x128xf32>
    %9 = arith.maximumf %5, %8 : vector<32x128xf32>
    %c0_3 = arith.constant 0 : index
    %c0_4 = arith.constant 0 : index
    %10 = vector.load %arg3[%c0_3, %c0_4] : memref<32x1xf32, #tpu.memory_space<vmem>>, vector<32x1xf32>
    %11 = vector.broadcast %10 : vector<32x1xf32> to vector<32x128xf32>
    %12 = arith.addf %9, %11 : vector<32x128xf32>
    %cst_5 = arith.constant 0.000000e+00 : f32
    %13 = vector.broadcast %cst_5 : f32 to vector<32x128xf32>
    %14 = arith.maximumf %12, %13 : vector<32x128xf32>
    %15 = arith.truncf %14 : vector<32x128xf32> to vector<32x128xbf16>
    %c0_6 = arith.constant 0 : index
    %c0_7 = arith.constant 0 : index
    %16 = vector.load %arg4[%c0_6, %c0_7] : memref<32x128xbf16, #tpu.memory_space<vmem>>, vector<32x128xbf16>
    tpu.vector_store %arg4[%c0_6, %c0_7], %15 {strides = array<i32>} : memref<32x128xbf16, #tpu.memory_space<vmem>>, vector<32x128xbf16>,
    return
  }
  func.func @transform_0(%arg0: i32) -> (i32, i32) {
    %c0_i32 = arith.constant 0 : i32
    %c0_i32_0 = arith.constant 0 : i32
    return %c0_i32, %arg0 : i32, i32
  }
  func.func @transform_1(%arg0: i32) -> (i32, i32) {
    %c0_i32 = arith.constant 0 : i32
    %c0_i32_0 = arith.constant 0 : i32
    %c0_i32_1 = arith.constant 0 : i32
    return %c0_i32, %c0_i32_0 : i32, i32
  }
  func.func @transform_2(%arg0: i32) -> (i32, i32) {
    %c0_i32 = arith.constant 0 : i32
    %c0_i32_0 = arith.constant 0 : i32
    %c0_i32_1 = arith.constant 0 : i32
    return %c0_i32, %c0_i32_0 : i32, i32
  }
  func.func @transform_3(%arg0: i32) -> (i32, i32) {
    %c0_i32 = arith.constant 0 : i32
    %c0_i32_0 = arith.constant 0 : i32
    return %c0_i32, %arg0 : i32, i32
  }
}

module attributes {stable_mosaic.version = 11 : i64} {
  func.func @conv_relu_pool_kernel(%arg0: i32, %arg1: memref<288x512xbf16, #tpu.memory_space<vmem>>, %arg2: memref<32x288xbf16, #tpu.memory_space<vmem>>, %arg3: memref<32x1xf32, #tpu.memory_space<vmem>>, %arg4: memref<32x128xbf16, #tpu.memory_space<vmem>>) attributes {dimension_semantics = [#tpu.dimension_semantics<parallel>], iteration_bounds = array<i64: 1>, scalar_prefetch = 0 : i64, scratch_operands = 0 : i64, tpu.core_type = #tpu.core_type<tc>, window_params = [{transform_indices = @transform_0, window_bounds = array<i64: 288, 512>}, {pipeline_mode = #tpu.pipeline_mode<synchronous>, transform_indices = @transform_1, window_bounds = array<i64: 32, 288>}, {pipeline_mode = #tpu.pipeline_mode<synchronous>, transform_indices = @transform_2, window_bounds = array<i64: 32, 1>}, {transform_indices = @transform_3, window_bounds = array<i64: 32, 128>}]} {
    %c0 = arith.constant 0 : index
    %c0_0 = arith.constant 0 : index
    %0 = vector.load %arg2[%c0, %c0_0] : memref<32x288xbf16, #tpu.memory_space<vmem>>, vector<32x288xbf16>
    %c0_1 = arith.constant 0 : index
    %c0_2 = arith.constant 0 : index
    %1 = vector.load %arg1[%c0_1, %c0_2] : memref<288x512xbf16, #tpu.memory_space<vmem>>, vector<288x512xbf16>
    %cst = arith.constant dense<0.000000e+00> : vector<32x512xf32>
    %2 = tpu.matmul %0, %1, %cst {dimension_numbers = #tpu.dot_dimension_numbers<[1], [0], [0], [1], [0, 0, 1, 1], [], []>} : vector<32x288xbf16>, vector<288x512xbf16>, vector<32x512xf32> -> vector<32x512xf32>
    %3 = vector.extract_strided_slice %2 {offsets = [0, 0], sizes = [32, 128], strides = [1, 1]} : vector<32x512xf32> to vector<32x128xf32>
    %4 = vector.extract_strided_slice %2 {offsets = [0, 128], sizes = [32, 128], strides = [1, 1]} : vector<32x512xf32> to vector<32x128xf32>
    %5 = arith.maximumf %3, %4 : vector<32x128xf32>
    %6 = vector.extract_strided_slice %2 {offsets = [0, 256], sizes = [32, 128], strides = [1, 1]} : vector<32x512xf32> to vector<32x128xf32>
    %7 = vector.extract_strided_slice %2 {offsets = [0, 384], sizes = [32, 128], strides = [1, 1]} : vector<32x512xf32> to vector<32x128xf32>
    %8 = arith.maximumf %6, %7 : vector<32x128xf32>
    %9 = arith.maximumf %5, %8 : vector<32x128xf32>
    %c0_3 = arith.constant 0 : index
    %c0_4 = arith.constant 0 : index
    %10 = vector.load %arg3[%c0_3, %c0_4] : memref<32x1xf32, #tpu.memory_space<vmem>>, vector<32x1xf32>
    %11 = vector.broadcast %10 : vector<32x1xf32> to vector<32x128xf32>
    %12 = arith.addf %9, %11 : vector<32x128xf32>
    %cst_5 = arith.constant 0.000000e+00 : f32
    %13 = vector.broadcast %cst_5 : f32 to vector<32x128xf32>
    %14 = arith.maximumf %12, %13 : vector<32x128xf32>
    %15 = arith.truncf %14 : vector<32x128xf32> to vector<32x128xbf16>
    %c0_6 = arith.constant 0 : index
    %c0_7 = arith.constant 0 : index
    %16 = vector.load %arg4[%c0_6, %c0_7] : memref<32x128xbf16, #tpu.memory_space<vmem>>, vector<32x128xbf16>
    tpu.vector_store %arg4[%c0_6, %c0_7], %15 {strides = array<i32>} : memref<32x128xbf16, #tpu.memory_space<vmem>>, vector<32x128xbf16>,
    return
  }
  func.func @transform_0(%arg0: i32) -> (i32, i32) {
    %c0_i32 = arith.constant 0 : i32
    %c0_i32_0 = arith.constant 0 : i32
    return %c0_i32, %arg0 : i32, i32
  }
  func.func @transform_1(%arg0: i32) -> (i32, i32) {
    %c0_i32 = arith.constant 0 : i32
    %c0_i32_0 = arith.constant 0 : i32
    %c0_i32_1 = arith.constant 0 : i32
    return %c0_i32, %c0_i32_0 : i32, i32
  }
  func.func @transform_2(%arg0: i32) -> (i32, i32) {
    %c0_i32 = arith.constant 0 : i32
    %c0_i32_0 = arith.constant 0 : i32
    %c0_i32_1 = arith.constant 0 : i32
    return %c0_i32, %c0_i32_0 : i32, i32
  }
  func.func @transform_3(%arg0: i32) -> (i32, i32) {
    %c0_i32 = arith.constant 0 : i32
    %c0_i32_0 = arith.constant 0 : i32
    return %c0_i32, %arg0 : i32, i32
  }
}

module attributes {stable_mosaic.version = 11 : i64} {
  func.func @conv_relu_pool_kernel(%arg0: i32, %arg1: memref<288x512xbf16, #tpu.memory_space<vmem>>, %arg2: memref<24x288xbf16, #tpu.memory_space<vmem>>, %arg3: memref<24x1xf32, #tpu.memory_space<vmem>>, %arg4: memref<24x128xbf16, #tpu.memory_space<vmem>>) attributes {dimension_semantics = [#tpu.dimension_semantics<parallel>], iteration_bounds = array<i64: 1>, scalar_prefetch = 0 : i64, scratch_operands = 0 : i64, tpu.core_type = #tpu.core_type<tc>, window_params = [{transform_indices = @transform_0, window_bounds = array<i64: 288, 512>}, {pipeline_mode = #tpu.pipeline_mode<synchronous>, transform_indices = @transform_1, window_bounds = array<i64: 24, 288>}, {pipeline_mode = #tpu.pipeline_mode<synchronous>, transform_indices = @transform_2, window_bounds = array<i64: 24, 1>}, {transform_indices = @transform_3, window_bounds = array<i64: 24, 128>}]} {
    %c0 = arith.constant 0 : index
    %c0_0 = arith.constant 0 : index
    %0 = vector.load %arg2[%c0, %c0_0] : memref<24x288xbf16, #tpu.memory_space<vmem>>, vector<24x288xbf16>
    %c0_1 = arith.constant 0 : index
    %c0_2 = arith.constant 0 : index
    %1 = vector.load %arg1[%c0_1, %c0_2] : memref<288x512xbf16, #tpu.memory_space<vmem>>, vector<288x512xbf16>
    %cst = arith.constant dense<0.000000e+00> : vector<24x512xf32>
    %2 = tpu.matmul %0, %1, %cst {dimension_numbers = #tpu.dot_dimension_numbers<[1], [0], [0], [1], [0, 0, 1, 1], [], []>} : vector<24x288xbf16>, vector<288x512xbf16>, vector<24x512xf32> -> vector<24x512xf32>
    %3 = vector.extract_strided_slice %2 {offsets = [0, 0], sizes = [24, 128], strides = [1, 1]} : vector<24x512xf32> to vector<24x128xf32>
    %4 = vector.extract_strided_slice %2 {offsets = [0, 128], sizes = [24, 128], strides = [1, 1]} : vector<24x512xf32> to vector<24x128xf32>
    %5 = arith.maximumf %3, %4 : vector<24x128xf32>
    %6 = vector.extract_strided_slice %2 {offsets = [0, 256], sizes = [24, 128], strides = [1, 1]} : vector<24x512xf32> to vector<24x128xf32>
    %7 = vector.extract_strided_slice %2 {offsets = [0, 384], sizes = [24, 128], strides = [1, 1]} : vector<24x512xf32> to vector<24x128xf32>
    %8 = arith.maximumf %6, %7 : vector<24x128xf32>
    %9 = arith.maximumf %5, %8 : vector<24x128xf32>
    %c0_3 = arith.constant 0 : index
    %c0_4 = arith.constant 0 : index
    %10 = vector.load %arg3[%c0_3, %c0_4] : memref<24x1xf32, #tpu.memory_space<vmem>>, vector<24x1xf32>
    %11 = vector.broadcast %10 : vector<24x1xf32> to vector<24x128xf32>
    %12 = arith.addf %9, %11 : vector<24x128xf32>
    %cst_5 = arith.constant 0.000000e+00 : f32
    %13 = vector.broadcast %cst_5 : f32 to vector<24x128xf32>
    %14 = arith.maximumf %12, %13 : vector<24x128xf32>
    %15 = arith.truncf %14 : vector<24x128xf32> to vector<24x128xbf16>
    %c0_6 = arith.constant 0 : index
    %c0_7 = arith.constant 0 : index
    %16 = vector.load %arg4[%c0_6, %c0_7] : memref<24x128xbf16, #tpu.memory_space<vmem>>, vector<24x128xbf16>
    tpu.vector_store %arg4[%c0_6, %c0_7], %15 {strides = array<i32>} : memref<24x128xbf16, #tpu.memory_space<vmem>>, vector<24x128xbf16>,
    return
  }
  func.func @transform_0(%arg0: i32) -> (i32, i32) {
    %c0_i32 = arith.constant 0 : i32
    %c0_i32_0 = arith.constant 0 : i32
    return %c0_i32, %arg0 : i32, i32
  }
  func.func @transform_1(%arg0: i32) -> (i32, i32) {
    %c0_i32 = arith.constant 0 : i32
    %c0_i32_0 = arith.constant 0 : i32
    %c0_i32_1 = arith.constant 0 : i32
    return %c0_i32, %c0_i32_0 : i32, i32
  }
  func.func @transform_2(%arg0: i32) -> (i32, i32) {
    %c0_i32 = arith.constant 0 : i32
    %c0_i32_0 = arith.constant 0 : i32
    %c0_i32_1 = arith.constant 0 : i32
    return %c0_i32, %c0_i32_0 : i32, i32
  }
  func.func @transform_3(%arg0: i32) -> (i32, i32) {
    %c0_i32 = arith.constant 0 : i32
    %c0_i32_0 = arith.constant 0 : i32
    return %c0_i32, %arg0 : i32, i32
  }
}

module attributes {stable_mosaic.version = 11 : i64} {
  func.func @fc_head_kernel(%arg0: i32, %arg1: memref<8x96xbf16, #tpu.memory_space<vmem>>, %arg2: memref<96x512xbf16, #tpu.memory_space<vmem>>, %arg3: memref<1x512xf32, #tpu.memory_space<vmem>>, %arg4: memref<512x128xbf16, #tpu.memory_space<vmem>>, %arg5: memref<1x128xf32, #tpu.memory_space<vmem>>, %arg6: memref<8x128xf32, #tpu.memory_space<vmem>>) attributes {dimension_semantics = [#tpu.dimension_semantics<parallel>], iteration_bounds = array<i64: 1>, scalar_prefetch = 0 : i64, scratch_operands = 0 : i64, tpu.core_type = #tpu.core_type<tc>, window_params = [{transform_indices = @transform_0, window_bounds = array<i64: 8, 96>}, {pipeline_mode = #tpu.pipeline_mode<synchronous>, transform_indices = @transform_1, window_bounds = array<i64: 96, 512>}, {pipeline_mode = #tpu.pipeline_mode<synchronous>, transform_indices = @transform_2, window_bounds = array<i64: 1, 512>}, {pipeline_mode = #tpu.pipeline_mode<synchronous>, transform_indices = @transform_3, window_bounds = array<i64: 512, 128>}, {pipeline_mode = #tpu.pipeline_mode<synchronous>, transform_indices = @transform_4, window_bounds = array<i64: 1, 128>}, {transform_indices = @transform_5, window_bounds = array<i64: 8, 128>}]} {
    %c0 = arith.constant 0 : index
    %c0_0 = arith.constant 0 : index
    %0 = vector.load %arg1[%c0, %c0_0] : memref<8x96xbf16, #tpu.memory_space<vmem>>, vector<8x96xbf16>
    %c0_1 = arith.constant 0 : index
    %c0_2 = arith.constant 0 : index
    %1 = vector.load %arg2[%c0_1, %c0_2] : memref<96x512xbf16, #tpu.memory_space<vmem>>, vector<96x512xbf16>
    %cst = arith.constant dense<0.000000e+00> : vector<8x512xf32>
    %2 = tpu.matmul %0, %1, %cst {dimension_numbers = #tpu.dot_dimension_numbers<[1], [0], [0], [1], [0, 0, 1, 1], [], []>} : vector<8x96xbf16>, vector<96x512xbf16>, vector<8x512xf32> -> vector<8x512xf32>
    %c0_3 = arith.constant 0 : index
    %c0_4 = arith.constant 0 : index
    %3 = vector.load %arg3[%c0_3, %c0_4] : memref<1x512xf32, #tpu.memory_space<vmem>>, vector<1x512xf32>
    %4 = vector.broadcast %3 : vector<1x512xf32> to vector<8x512xf32>
    %5 = arith.addf %2, %4 : vector<8x512xf32>
    %cst_5 = arith.constant 0.000000e+00 : f32
    %6 = vector.broadcast %cst_5 : f32 to vector<8x512xf32>
    %7 = arith.maximumf %5, %6 : vector<8x512xf32>
    %8 = arith.truncf %7 : vector<8x512xf32> to vector<8x512xbf16>
    %c0_6 = arith.constant 0 : index
    %c0_7 = arith.constant 0 : index
    %9 = vector.load %arg4[%c0_6, %c0_7] : memref<512x128xbf16, #tpu.memory_space<vmem>>, vector<512x128xbf16>
    %cst_8 = arith.constant dense<0.000000e+00> : vector<8x128xf32>
    %10 = tpu.matmul %8, %9, %cst_8 {dimension_numbers = #tpu.dot_dimension_numbers<[1], [0], [0], [1], [0, 0, 1, 1], [], []>} : vector<8x512xbf16>, vector<512x128xbf16>, vector<8x128xf32> -> vector<8x128xf32>
    %c0_9 = arith.constant 0 : index
    %c0_10 = arith.constant 0 : index
    %11 = vector.load %arg5[%c0_9, %c0_10] : memref<1x128xf32, #tpu.memory_space<vmem>>, vector<1x128xf32>
    %12 = vector.broadcast %11 : vector<1x128xf32> to vector<8x128xf32>
    %13 = arith.addf %10, %12 : vector<8x128xf32>
    %cst_11 = arith.constant dense<0xFF800000> : vector<8xf32>
    %14 = vector.multi_reduction <maximumf>, %13, %cst_11 [1] : vector<8x128xf32> to vector<8xf32>
    %15 = vector.shape_cast %14 : vector<8xf32> to vector<8x1xf32>
    %16 = vector.broadcast %15 : vector<8x1xf32> to vector<8x128xf32>
    %17 = arith.subf %13, %16 : vector<8x128xf32>
    %18 = math.exp %17 : vector<8x128xf32>
    %cst_12 = arith.constant dense<0.000000e+00> : vector<8xf32>
    %19 = vector.multi_reduction <add>, %18, %cst_12 [1] : vector<8x128xf32> to vector<8xf32>
    %20 = vector.shape_cast %19 : vector<8xf32> to vector<8x1xf32>
    %21 = vector.broadcast %20 : vector<8x1xf32> to vector<8x128xf32>
    %22 = arith.divf %18, %21 : vector<8x128xf32>
    %c0_13 = arith.constant 0 : index
    %c0_14 = arith.constant 0 : index
    %23 = vector.load %arg6[%c0_13, %c0_14] : memref<8x128xf32, #tpu.memory_space<vmem>>, vector<8x128xf32>
    tpu.vector_store %arg6[%c0_13, %c0_14], %22 {strides = array<i32>} : memref<8x128xf32, #tpu.memory_space<vmem>>, vector<8x128xf32>,
    return
  }
  func.func @transform_0(%arg0: i32) -> (i32, i32) {
    %c0_i32 = arith.constant 0 : i32
    %c0_i32_0 = arith.constant 0 : i32
    return %arg0, %c0_i32 : i32, i32
  }
  func.func @transform_1(%arg0: i32) -> (i32, i32) {
    %c0_i32 = arith.constant 0 : i32
    %c0_i32_0 = arith.constant 0 : i32
    %c0_i32_1 = arith.constant 0 : i32
    return %c0_i32, %c0_i32_0 : i32, i32
  }
  func.func @transform_2(%arg0: i32) -> (i32, i32) {
    %c0_i32 = arith.constant 0 : i32
    %c0_i32_0 = arith.constant 0 : i32
    %c0_i32_1 = arith.constant 0 : i32
    return %c0_i32, %c0_i32_0 : i32, i32
  }
  func.func @transform_3(%arg0: i32) -> (i32, i32) {
    %c0_i32 = arith.constant 0 : i32
    %c0_i32_0 = arith.constant 0 : i32
    %c0_i32_1 = arith.constant 0 : i32
    return %c0_i32, %c0_i32_0 : i32, i32
  }
  func.func @transform_4(%arg0: i32) -> (i32, i32) {
    %c0_i32 = arith.constant 0 : i32
    %c0_i32_0 = arith.constant 0 : i32
    %c0_i32_1 = arith.constant 0 : i32
    return %c0_i32, %c0_i32_0 : i32, i32
  }
  func.func @transform_5(%arg0: i32) -> (i32, i32) {
    %c0_i32 = arith.constant 0 : i32
    %c0_i32_0 = arith.constant 0 : i32
    return %arg0, %c0_i32 : i32, i32
  }
}

</mosaic_0001>

<bundles_post_ra>
// kernel: net_forward.4
= control target key start
LH: loop header
LB: loop body
LE: loop exit
PB: predicated region body
PF: predicated region fallthrough
CT: control target
= control target key end

     0   :  { %vm80_vm0 = vcmask 1044480   ;;  %vm81_vm1 = vcmask 1045504   ;;  %v321_v1 = vmov 65535   ;;  %v322_v3 = vmov 0   ;;  %s391_s0 = inlined_call_operand.vmem [shape: bf16[27,512], index: 0, kind: input, shape index: {}]   ;;  %s392_s2 = inlined_call_operand.vmem [shape: f32[32,1], index: 2, kind: input, shape index: {}]   ;;  %s393_s1 = inlined_call_operand.vmem [shape: bf16[32,27], index: 1, kind: input, shape index: {}]   ;;  %s394_s3 = inlined_call_operand.vmem [shape: bf16[32,128], index: 3, kind: output, shape index: {}]  }
   0x1   :  { %v307_v0 = vld [vmem:[%s391_s0 + $0x4] ss:$16 sps:$4 sm:$0xff]   ;;  %v82_v2 = vsel %vm80_vm0, 4294967295, %v321_v1  ;;  %128 = vmatprep.mubr.bf16.mxu0 %v322_v3  ;;  %181 = vmatprep.mubr.bf16.mxu1 %v322_v3  ;;  %v309_v4 = vld [vmem:[%s391_s0 + $0xc] ss:$16 sps:$4 sm:$0xff]   ;;  %vm73_vm2 = vcmask 220160  }
   0x2   :  { %305 = vset.pattern.permute.xlu0 %v322_v3  ;;  %306 = vset.pattern.permute.xlu1 %v322_v3  ;;  %v311_v5 = vld [vmem:[%s391_s0] ss:$16 sps:$4 sm:$0xff]   ;;  %v312_v6 = vld [vmem:[%s391_s0 + $0x8] ss:$16 sps:$4 sm:$0xff]   ;;  %v83_v7 = vsel %vm81_vm1, %v82_v2, 0 }
   0x3   :  { %96 = vmatprep.subr.bf16.mxu0 %v307_v0  ;;  %149 = vmatprep.subr.bf16.mxu1 %v309_v4  ;;  %v313_v8 = vld [vmem:[%s391_s0 + $0x24] ss:$16 sps:$4 sm:$0x3f]   ;;  %v315_v9 = vld [vmem:[%s391_s0 + $0x2c] ss:$16 sps:$4 sm:$0x3f]  }
   0x4   :  { %97 = vmatpush1.bf16.msra.mxu0 %v311_v5  ;;  %150 = vmatpush1.bf16.msra.mxu1 %v312_v6  ;;  %v88_v10 = vand.u32 %v313_v8, %v83_v7  ;;  %v317_v11 = vld [vmem:[%s391_s0 + $0x20] ss:$16 sps:$4 sm:$0x3f]   ;;  %v318_v12 = vld [vmem:[%s391_s0 + $0x28] ss:$16 sps:$4 sm:$0x3f]   ;;  %v94_v13 = vand.u32 %v315_v9, %v83_v7 }
   0x5   :  { %v85_v14 = vand.u32 %v317_v11, %v83_v7  ;;  %v91_v15 = vand.u32 %v318_v12, %v83_v7  ;;  %v214_v16 = vld [vmem:[%s392_s2] sm:$0xff]  ;;  %v216_v18 = vld [vmem:[%s392_s2 + $0x10] sm:$0xff]  ;;  %v215_v19 = vld [vmem:[%s392_s2 + $0x8] sm:$0xff] }
   0x6   :  { %98 = vmatprep.subr.bf16.mxu0 %v88_v10  ;;  %151 = vmatprep.subr.bf16.mxu1 %v94_v13  ;;  %v319_v17 = vld [vmem:[%s393_s1] sm:$0xff]   ;;  %v217_v20 = vld [vmem:[%s392_s2 + $0x18] sm:$0xff]  ;;  %v320_v21 = vld [vmem:[%s393_s1 + $0x8] sm:$0xff]  }
   0x7   :  { %220 = vperm.xlu0 %305, %v214_v16   ;;  %230 = vperm.xlu1 %306, %v216_v18  }
   0x8   :  { %99 = vmatpush1.bf16.msra.mxu0 %v85_v14  ;;  %152 = vmatpush1.bf16.msra.mxu1 %v91_v15 }
   0xb   :  { %280 = vmatmul.mubr.msk.bf16.vlgmr.msra.gmra.mrb[0].mxu0 %vm73_vm2, %v319_v17  ;;  %282 = vmatmul.mubr.msk.bf16.vlgmr.msra.gmra.mrb[0].mxu1 %vm73_vm2, %v319_v17 }
   0xc   :  { %138 = vmatprep.mubr.bf16.mxu0 %v322_v3  ;;  %191 = vmatprep.mubr.bf16.mxu1 %v322_v3 }
   0xd   :  { %225 = vperm.xlu0 %305, %v215_v19   ;;  %235 = vperm.xlu1 %306, %v217_v20  }
  0x13   :  { %281 = vmatmul.mubr.msk.bf16.gmra.mrb[4].mxu0 %vm73_vm2, %v320_v21  ;;  %283 = vmatmul.mubr.msk.bf16.gmra.mrb[4].mxu1 %vm73_vm2, %v320_v21 }
  0x86   :  { %v221_v22 = vpop.permute.xlu0 %220  ;;  %v231_v39 = vpop.permute.xlu1 %230 }
  0x8c   :  { %v226_v36 = vpop.permute.xlu0 %225  ;;  %v236_v59 = vpop.permute.xlu1 %235 }
  0xde   :  { %v130_v23 = vpop.f32.mrb[0].mxu0  ;;  %v183_v24 = vpop.f32.mrb[0].mxu1 }
  0xdf   :  { %v132_v25 = vpop.f32.mrb[1].mxu0  ;;  %v185_v26 = vpop.f32.mrb[1].mxu1 }
  0xe0   :  { %v202_v27 = vmax.f32 %v130_v23, %v132_v25  ;;  %v206_v28 = vmax.f32 %v183_v24, %v185_v26  ;;  %v134_v29 = vpop.f32.mrb[2].mxu0  ;;  %v187_v30 = vpop.f32.mrb[2].mxu1 }
  0xe1   :  { %v136_v31 = vpop.f32.mrb[3].mxu0  ;;  %v189_v32 = vpop.f32.mrb[3].mxu1 }
  0xe2   :  { %v210_v33 = vmax.f32 %v202_v27, %v206_v28  ;;  %v203_v34 = vmax.f32 %v134_v29, %v136_v31  ;;  %v207_v35 = vmax.f32 %v187_v30, %v189_v32 }
  0xe4   :  { %v238_v37 = vadd.f32 %v221_v22, %v210_v33  ;;  %v211_v38 = vmax.f32 %v203_v34, %v207_v35 }
  0xe6   :  { %v239_v40 = vadd.f32 %v226_v36, %v211_v38  ;;  %v140_v41 = vpop.f32.mrb[4].mxu0  ;;  %v193_v42 = vpop.f32.mrb[4].mxu1  ;;  %v242_v45 = vmax.f32 %v238_v37, 0.0 }
  0xe7   :  { %v142_v43 = vpop.f32.mrb[5].mxu0  ;;  %v195_v44 = vpop.f32.mrb[5].mxu1 }
  0xe8   :  { %v243_v46 = vmax.f32 %v239_v40, 0.0  ;;  %v204_v47 = vmax.f32 %v140_v41, %v142_v43  ;;  %v208_v48 = vmax.f32 %v193_v42, %v195_v44  ;;  %v144_v49 = vpop.f32.mrb[6].mxu0  ;;  %v197_v50 = vpop.f32.mrb[6].mxu1 }
  0xe9   :  { %v146_v51 = vpop.f32.mrb[7].mxu0  ;;  %v199_v52 = vpop.f32.mrb[7].mxu1 }
  0xea   :  { %v295_v53 = vpack.c.bf16 %v243_v46, %v242_v45  ;;  %v212_v54 = vmax.f32 %v204_v47, %v208_v48  ;;  %v205_v55 = vmax.f32 %v144_v49, %v146_v51  ;;  %v209_v56 = vmax.f32 %v197_v50, %v199_v52 }
  0xec   :  { %296 = vst [vmem:[%s394_s3] sm:$0xff] %v295_v53   ;;  %v240_v57 = vadd.f32 %v231_v39, %v212_v54  ;;  %v213_v58 = vmax.f32 %v205_v55, %v209_v56 }
  0xee   :  { %v241_v60 = vadd.f32 %v236_v59, %v213_v58  ;;  %v244_v61 = vmax.f32 %v240_v57, 0.0 }
  0xf0   :  { %v245_v62 = vmax.f32 %v241_v60, 0.0 }
  0xf2   :  { %v300_v63 = vpack.c.bf16 %v245_v62, %v244_v61 }
  0xf4   :  { %302 = vst [vmem:[%s394_s3 + $0x8] sm:$0xff] %v300_v63  }

// kernel: net_forward.5
= control target key start
LH: loop header
LB: loop body
LE: loop exit
PB: predicated region body
PF: predicated region fallthrough
CT: control target
= control target key end

     0   :  { %v1008_v1 = vmov 0   ;;  %vm485_vm0 = vcmask 261120   ;;  %s1287_s0 = inlined_call_operand.vmem [shape: bf16[288,512], index: 0, kind: input, shape index: {}]   ;;  %s1288_s1 = inlined_call_operand.vmem [shape: bf16[32,288], index: 1, kind: input, shape index: {}]   ;;  %s1289_s2 = inlined_call_operand.vmem [shape: f32[32,1], index: 2, kind: input, shape index: {}]   ;;  %s1290_s3 = inlined_call_operand.vmem [shape: bf16[32,128], index: 3, kind: output, shape index: {}]  }
   0x1   :  { %v892_v0 = vld [vmem:[%s1287_s0 + $0x4] ss:$16 sps:$4 sm:$0xff]   ;;  %890 = vset.pattern.permute.xlu0 %v1008_v1  ;;  %891 = vset.pattern.permute.xlu1 %v1008_v1  ;;  %v894_v2 = vld [vmem:[%s1287_s0 + $0xc] ss:$16 sps:$4 sm:$0xff]   ;;  %v896_v3 = vld [vmem:[%s1287_s0] ss:$16 sps:$4 sm:$0xff]  }
   0x2   :  { %492 = vmatprep.subr.bf16.mxu0 %v892_v0  ;;  %v897_v4 = vld [vmem:[%s1287_s0 + $0x8] ss:$16 sps:$4 sm:$0xff]   ;;  %598 = vmatprep.subr.bf16.mxu1 %v894_v2  ;;  %v898_v5 = vld [vmem:[%s1287_s0 + $0x24] ss:$16 sps:$4 sm:$0xff]   ;;  %v900_v6 = vld [vmem:[%s1287_s0 + $0x2c] ss:$16 sps:$4 sm:$0xff]  }
   0x3   :  { %493 = vmatpush1.bf16.msra.mxu0 %v896_v3  ;;  %599 = vmatpush1.bf16.msra.mxu1 %v897_v4  ;;  %v902_v7 = vld [vmem:[%s1287_s0 + $0x20] ss:$16 sps:$4 sm:$0xff]   ;;  %v903_v8 = vld [vmem:[%s1287_s0 + $0x28] ss:$16 sps:$4 sm:$0xff]   ;;  %v904_v9 = vld [vmem:[%s1287_s0 + $0x44] ss:$16 sps:$4 sm:$0xff]  }
   0x4   :  { %494 = vmatprep.subr.bf16.mxu0 %v898_v5  ;;  %600 = vmatprep.subr.bf16.mxu1 %v900_v6  ;;  %v906_v10 = vld [vmem:[%s1287_s0 + $0x4c] ss:$16 sps:$4 sm:$0xff]   ;;  %v908_v11 = vld [vmem:[%s1287_s0 + $0x40] ss:$16 sps:$4 sm:$0xff]   ;;  %v909_v12 = vld [vmem:[%s1287_s0 + $0x48] ss:$16 sps:$4 sm:$0xff]  }
   0x5   :  { %v910_v13 = vld [vmem:[%s1287_s0 + $0x64] ss:$16 sps:$4 sm:$0xff]   ;;  %v912_v14 = vld [vmem:[%s1287_s0 + $0x6c] ss:$16 sps:$4 sm:$0xff]   ;;  %v914_v15 = vld [vmem:[%s1287_s0 + $0x60] ss:$16 sps:$4 sm:$0xff]  }
   0x6   :  { %v915_v16 = vld [vmem:[%s1287_s0 + $0x68] ss:$16 sps:$4 sm:$0xff]   ;;  %v916_v17 = vld [vmem:[%s1287_s0 + $0x84] ss:$16 sps:$4 sm:$0xff]   ;;  %v918_v18 = vld [vmem:[%s1287_s0 + $0x8c] ss:$16 sps:$4 sm:$0xff]  }
   0x7   :  { %495 = vmatpush1.bf16.msra.mxu0 %v902_v7  ;;  %601 = vmatpush1.bf16.msra.mxu1 %v903_v8  ;;  %v920_v19 = vld [vmem:[%s1287_s0 + $0x80] ss:$16 sps:$4 sm:$0xff]   ;;  %v921_v20 = vld [vmem:[%s1287_s0 + $0x88] ss:$16 sps:$4 sm:$0xff]   ;;  %v922_v21 = vld [vmem:[%s1287_s0 + $0xa4] ss:$16 sps:$4 sm:$0xff]  }
   0x8   :  { %496 = vmatprep.subr.bf16.mxu0 %v904_v9  ;;  %602 = vmatprep.subr.bf16.mxu1 %v906_v10  ;;  %v924_v22 = vld [vmem:[%s1287_s0 + $0xac] ss:$16 sps:$4 sm:$0xff]   ;;  %v926_v23 = vld [vmem:[%s1287_s0 + $0xa0] ss:$16 sps:$4 sm:$0xff]   ;;  %v927_v24 = vld [vmem:[%s1287_s0 + $0xa8] ss:$16 sps:$4 sm:$0xff]  }
   0x9   :  { %v928_v25 = vld [vmem:[%s1287_s0 + $0xc4] ss:$16 sps:$4 sm:$0xff]   ;;  %v930_v26 = vld [vmem:[%s1287_s0 + $0xcc] ss:$16 sps:$4 sm:$0xff]   ;;  %v932_v27 = vld [vmem:[%s1287_s0 + $0xc0] ss:$16 sps:$4 sm:$0xff]  }
   0xa   :  { %v933_v28 = vld [vmem:[%s1287_s0 + $0xc8] ss:$16 sps:$4 sm:$0xff]   ;;  %v934_v29 = vld [vmem:[%s1287_s0 + $0xe4] ss:$16 sps:$4 sm:$0xff]   ;;  %v936_v30 = vld [vmem:[%s1287_s0 + $0xec] ss:$16 sps:$4 sm:$0xff]  }
   0xb   :  { %497 = vmatpush1.bf16.msra.mxu0 %v908_v11  ;;  %603 = vmatpush1.bf16.msra.mxu1 %v909_v12  ;;  %v938_v31 = vld [vmem:[%s1287_s0 + $0xe0] ss:$16 sps:$4 sm:$0xff]   ;;  %v939_v32 = vld [vmem:[%s1287_s0 + $0xe8] ss:$16 sps:$4 sm:$0xff]   ;;  %v940_v33 = vld [vmem:[%s1287_s0 + $0x104] ss:$16 sps:$4 sm:$0xff]  }
   0xc   :  { %498 = vmatprep.subr.bf16.mxu0 %v910_v13  ;;  %604 = vmatprep.subr.bf16.mxu1 %v912_v14  ;;  %v942_v34 = vld [vmem:[%s1287_s0 + $0x10c] ss:$16 sps:$4 sm:$0xff]   ;;  %v944_v35 = vld [vmem:[%s1287_s0 + $0x100] ss:$16 sps:$4 sm:$0xff]   ;;  %v945_v36 = vld [vmem:[%s1287_s0 + $0x108] ss:$16 sps:$4 sm:$0xff]  }
   0xd   :  { %v946_v37 = vld [vmem:[%s1287_s0 + $0x124] ss:$16 sps:$4 sm:$0xff]   ;;  %v948_v38 = vld [vmem:[%s1287_s0 + $0x12c] ss:$16 sps:$4 sm:$0xff]   ;;  %v950_v39 = vld [vmem:[%s1287_s0 + $0x120] ss:$16 sps:$4 sm:$0xff]  }
   0xe   :  { %v951_v40 = vld [vmem:[%s1287_s0 + $0x128] ss:$16 sps:$4 sm:$0xff]   ;;  %v952_v41 = vld [vmem:[%s1287_s0 + $0x144] ss:$16 sps:$4 sm:$0xff]   ;;  %v954_v42 = vld [vmem:[%s1287_s0 + $0x14c] ss:$16 sps:$4 sm:$0xff]  }
   0xf   :  { %499 = vmatpush1.bf16.msra.mxu0 %v914_v15  ;;  %605 = vmatpush1.bf16.msra.mxu1 %v915_v16  ;;  %v956_v43 = vld [vmem:[%s1287_s0 + $0x140] ss:$16 sps:$4 sm:$0xff]   ;;  %v957_v44 = vld [vmem:[%s1287_s0 + $0x148] ss:$16 sps:$4 sm:$0xff]   ;;  %v958_v45 = vld [vmem:[%s1287_s0 + $0x164] ss:$16 sps:$4 sm:$0xff]  }
  0x10   :  { %500 = vmatprep.subr.bf16.mxu0 %v916_v17  ;;  %606 = vmatprep.subr.bf16.mxu1 %v918_v18  ;;  %v960_v46 = vld [vmem:[%s1287_s0 + $0x16c] ss:$16 sps:$4 sm:$0xff]   ;;  %v962_v47 = vld [vmem:[%s1287_s0 + $0x160] ss:$16 sps:$4 sm:$0xff]   ;;  %v963_v48 = vld [vmem:[%s1287_s0 + $0x168] ss:$16 sps:$4 sm:$0xff]  }
  0x11   :  { %v990_v49 = vld [vmem:[%s1288_s1 + $0x4] ss:$12 sps:$4 sm:$0xff]   ;;  %v966_v51 = vld [vmem:[%s1287_s0 + $0x18c] ss:$16 sps:$4 sm:$0xff]   ;;  %v969_v53 = vld [vmem:[%s1287_s0 + $0x188] ss:$16 sps:$4 sm:$0xff]  }
  0x12   :  { %v964_v50 = vld [vmem:[%s1287_s0 + $0x184] ss:$16 sps:$4 sm:$0xff]   ;;  %524 = vmatprep.mubr.bf16.mxu0 %v990_v49  ;;  %630 = vmatprep.mubr.bf16.mxu1 %v990_v49  ;;  %v968_v52 = vld [vmem:[%s1287_s0 + $0x180] ss:$16 sps:$4 sm:$0xff]   ;;  %v972_v55 = vld [vmem:[%s1287_s0 + $0x1ac] ss:$16 sps:$4 sm:$0xff]  }
  0x13   :  { %501 = vmatpush1.bf16.msra.mxu0 %v920_v19  ;;  %607 = vmatpush1.bf16.msra.mxu1 %v921_v20  ;;  %v970_v54 = vld [vmem:[%s1287_s0 + $0x1a4] ss:$16 sps:$4 sm:$0xff]   ;;  %v974_v56 = vld [vmem:[%s1287_s0 + $0x1a0] ss:$16 sps:$4 sm:$0xff]   ;;  %v975_v57 = vld [vmem:[%s1287_s0 + $0x1a8] ss:$16 sps:$4 sm:$0xff]  }
  0x14   :  { %502 = vmatprep.subr.bf16.mxu0 %v922_v21  ;;  %608 = vmatprep.subr.bf16.mxu1 %v924_v22  ;;  %v716_v58 = vld [vmem:[%s1289_s2] sm:$0xff]  ;;  %v978_v60 = vld [vmem:[%s1287_s0 + $0x1cc] ss:$16 sps:$4 sm:$0xff]   ;;  %v718_v61 = vld [vmem:[%s1289_s2 + $0x10] sm:$0xff] }
  0x15   :  { %v976_v59 = vld [vmem:[%s1287_s0 + $0x1c4] ss:$16 sps:$4 sm:$0xff]   ;;  %722 = vperm.xlu0 %890, %v716_v58   ;;  %732 = vperm.xlu1 %891, %v718_v61   ;;  %v717_v62 = vld [vmem:[%s1289_s2 + $0x8] sm:$0xff]  ;;  %v719_v63 = vld [vmem:[%s1289_s2 + $0x18] sm:$0xff] }
  0x16   :  { %v980_v0 = vld [vmem:[%s1287_s0 + $0x1c0] ss:$16 sps:$4 sm:$0xff]   ;;  %v981_v2 = vld [vmem:[%s1287_s0 + $0x1c8] ss:$16 sps:$4 sm:$0xff]   ;;  %v982_v3 = vld [vmem:[%s1287_s0 + $0x1e4] ss:$16 sps:$4 sm:$0xff]  }
  0x17   :  { %503 = vmatpush1.bf16.msra.mxu0 %v926_v23  ;;  %609 = vmatpush1.bf16.msra.mxu1 %v927_v24  ;;  %v984_v4 = vld [vmem:[%s1287_s0 + $0x1ec] ss:$16 sps:$4 sm:$0xff]   ;;  %v986_v5 = vld [vmem:[%s1287_s0 + $0x1e0] ss:$16 sps:$4 sm:$0xff]   ;;  %v987_v6 = vld [vmem:[%s1287_s0 + $0x1e8] ss:$16 sps:$4 sm:$0xff]  }
  0x18   :  { %504 = vmatprep.subr.bf16.mxu0 %v928_v25  ;;  %610 = vmatprep.subr.bf16.mxu1 %v930_v26  ;;  %v993_v7 = vld [vmem:[%s1287_s0 + $0x204] ss:$16 sps:$4 sm:$0xff]   ;;  %v996_v8 = vld [vmem:[%s1287_s0 + $0x20c] ss:$16 sps:$4 sm:$0xff]   ;;  %v991_v10 = vld [vmem:[%s1287_s0 + $0x200] ss:$16 sps:$4 sm:$0xff]  }
  0x19   :  { %727 = vperm.xlu0 %890, %v717_v62   ;;  %737 = vperm.xlu1 %891, %v719_v63   ;;  %v988_v9 = vld [vmem:[%s1288_s1] ss:$12 sps:$4 sm:$0xff]   ;;  %v994_v11 = vld [vmem:[%s1287_s0 + $0x208] ss:$16 sps:$4 sm:$0xff]   ;;  %v1002_v13 = vld [vmem:[%s1287_s0 + $0x224] ss:$16 sps:$4 sm:$0xff]  }
  0x1a   :  { %v997_v12 = vld [vmem:[%s1288_s1 + $0x1c] ss:$12 sps:$4 sm:$0xff]   ;;  %v1000_v15 = vld [vmem:[%s1287_s0 + $0x220] ss:$16 sps:$4 sm:$0xff]   ;;  %v999_v17 = vld [vmem:[%s1288_s1 + $0x18] ss:$12 sps:$4 sm:$0xff]  }
  0x1b   :  { %505 = vmatpush1.bf16.msra.mxu0 %v932_v27  ;;  %611 = vmatpush1.bf16.msra.mxu1 %v933_v28  ;;  %v1005_v14 = vld [vmem:[%s1287_s0 + $0x22c] ss:$16 sps:$4 sm:$0xff]   ;;  %v1003_v16 = vld [vmem:[%s1287_s0 + $0x228] ss:$16 sps:$4 sm:$0xff]  }
  0x1c   :  { %506 = vmatprep.subr.bf16.mxu0 %v934_v29  ;;  %612 = vmatprep.subr.bf16.mxu1 %v936_v30  ;;  %v1006_v18 = vld [vmem:[%s1288_s1 + $0x8] ss:$12 sps:$4 sm:$0xff]   ;;  %v1007_v19 = vld [vmem:[%s1288_s1 + $0x20] ss:$12 sps:$4 sm:$0xff]  }
  0x1f   :  { %507 = vmatpush1.bf16.msra.mxu0 %v938_v31  ;;  %613 = vmatpush1.bf16.msra.mxu1 %v939_v32 }
  0x20   :  { %508 = vmatprep.subr.bf16.mxu0 %v940_v33  ;;  %614 = vmatprep.subr.bf16.mxu1 %v942_v34 }
  0x23   :  { %509 = vmatpush1.bf16.msra.mxu0 %v944_v35  ;;  %615 = vmatpush1.bf16.msra.mxu1 %v945_v36 }
  0x24   :  { %510 = vmatprep.subr.bf16.mxu0 %v946_v37  ;;  %616 = vmatprep.subr.bf16.mxu1 %v948_v38 }
  0x27   :  { %511 = vmatpush1.bf16.msra.mxu0 %v950_v39  ;;  %617 = vmatpush1.bf16.msra.mxu1 %v951_v40 }
  0x28   :  { %512 = vmatprep.subr.bf16.mxu0 %v952_v41  ;;  %618 = vmatprep.subr.bf16.mxu1 %v954_v42 }
  0x2b   :  { %513 = vmatpush1.bf16.msra.mxu0 %v956_v43  ;;  %619 = vmatpush1.bf16.msra.mxu1 %v957_v44 }
  0x2c   :  { %514 = vmatprep.subr.bf16.mxu0 %v958_v45  ;;  %620 = vmatprep.subr.bf16.mxu1 %v960_v46 }
  0x2f   :  { %515 = vmatpush1.bf16.msra.mxu0 %v962_v47  ;;  %621 = vmatpush1.bf16.msra.mxu1 %v963_v48 }
  0x30   :  { %516 = vmatprep.subr.bf16.mxu0 %v964_v50  ;;  %622 = vmatprep.subr.bf16.mxu1 %v966_v51 }
  0x33   :  { %517 = vmatpush1.bf16.msra.mxu0 %v968_v52  ;;  %623 = vmatpush1.bf16.msra.mxu1 %v969_v53 }
  0x34   :  { %518 = vmatprep.subr.bf16.mxu0 %v970_v54  ;;  %624 = vmatprep.subr.bf16.mxu1 %v972_v55 }
  0x37   :  { %519 = vmatpush1.bf16.msra.mxu0 %v974_v56  ;;  %625 = vmatpush1.bf16.msra.mxu1 %v975_v57 }
  0x38   :  { %520 = vmatprep.subr.bf16.mxu0 %v976_v59  ;;  %626 = vmatprep.subr.bf16.mxu1 %v978_v60 }
  0x3b   :  { %521 = vmatpush1.bf16.msra.mxu0 %v980_v0  ;;  %627 = vmatpush1.bf16.msra.mxu1 %v981_v2 }
  0x3c   :  { %522 = vmatprep.subr.bf16.mxu0 %v982_v3  ;;  %628 = vmatprep.subr.bf16.mxu1 %v984_v4 }
  0x3f   :  { %523 = vmatpush1.bf16.msra.mxu0 %v986_v5  ;;  %629 = vmatpush1.bf16.msra.mxu1 %v987_v6 }
  0x40   :  { %545 = vmatprep.subr.bf16.mxu0 %v993_v7  ;;  %651 = vmatprep.subr.bf16.mxu1 %v996_v8 }
  0x42   :  { %525 = vmatmul.mubr.bf16.vlgmr.msra.gmra.mrb[0].mxu0 %v988_v9  ;;  %631 = vmatmul.mubr.bf16.vlgmr.msra.gmra.mrb[0].mxu1 %v988_v9 }
  0x43   :  { %546 = vmatpush1.bf16.msra.mxu0 %v991_v10  ;;  %652 = vmatpush1.bf16.msra.mxu1 %v994_v11 }
  0x44   :  { %534 = vmatprep.mubr.bf16.mxu0 %v997_v12  ;;  %640 = vmatprep.mubr.bf16.mxu1 %v997_v12 }
  0x45   :  { %547 = vmatprep.subr.bf16.mxu0 %v1002_v13  ;;  %653 = vmatprep.subr.bf16.mxu1 %v1005_v14 }
  0x47   :  { %548 = vmatpush1.bf16.msra.mxu0 %v1000_v15  ;;  %654 = vmatpush1.bf16.msra.mxu1 %v1003_v16 }
  0x4a   :  { %535 = vmatmul.mubr.bf16.gmra.mrb[4].mxu0 %v999_v17  ;;  %641 = vmatmul.mubr.bf16.gmra.mrb[4].mxu1 %v999_v17 }
  0x4b   :  { %577 = vmatprep.mubr.bf16.mxu0 %v1008_v1  ;;  %683 = vmatprep.mubr.bf16.mxu1 %v1008_v1 }
  0x52   :  { %850 = vmatmul.mubr.msk.bf16.vlgmr.msra.gmra.mrb[0].mxu0 %vm485_vm0, %v1006_v18  ;;  %852 = vmatmul.mubr.msk.bf16.vlgmr.msra.gmra.mrb[0].mxu1 %vm485_vm0, %v1006_v18 }
  0x53   :  { %587 = vmatprep.mubr.bf16.mxu0 %v1008_v1  ;;  %693 = vmatprep.mubr.bf16.mxu1 %v1008_v1 }
  0x5a   :  { %851 = vmatmul.mubr.msk.bf16.gmra.mrb[4].mxu0 %vm485_vm0, %v1007_v19  ;;  %853 = vmatmul.mubr.msk.bf16.gmra.mrb[4].mxu1 %vm485_vm0, %v1007_v19 }
  0x94   :  { %v723_v20 = vpop.permute.xlu0 %722  ;;  %v733_v36 = vpop.permute.xlu1 %732 }
  0x98   :  { %v728_v33 = vpop.permute.xlu0 %727  ;;  %v738_v56 = vpop.permute.xlu1 %737 }
 0x125   :  { %v579_v21 = vpop.f32.mrb[0].mxu0  ;;  %v685_v22 = vpop.f32.mrb[0].mxu1 }
 0x126   :  { %v581_v23 = vpop.f32.mrb[1].mxu0  ;;  %v687_v24 = vpop.f32.mrb[1].mxu1 }
 0x127   :  { %v704_v25 = vmax.f32 %v579_v21, %v581_v23  ;;  %v708_v26 = vmax.f32 %v685_v22, %v687_v24  ;;  %v583_v27 = vpop.f32.mrb[2].mxu0  ;;  %v689_v28 = vpop.f32.mrb[2].mxu1 }
 0x128   :  { %v585_v29 = vpop.f32.mrb[3].mxu0  ;;  %v691_v30 = vpop.f32.mrb[3].mxu1 }
 0x129   :  { %v712_v31 = vmax.f32 %v704_v25, %v708_v26  ;;  %v705_v32 = vmax.f32 %v583_v27, %v585_v29  ;;  %v709_v1 = vmax.f32 %v689_v28, %v691_v30 }
 0x12b   :  { %v740_v34 = vadd.f32 %v723_v20, %v712_v31  ;;  %v713_v35 = vmax.f32 %v705_v32, %v709_v1 }
 0x12d   :  { %v741_v37 = vadd.f32 %v728_v33, %v713_v35  ;;  %v589_v38 = vpop.f32.mrb[4].mxu0  ;;  %v695_v39 = vpop.f32.mrb[4].mxu1  ;;  %v744_v42 = vmax.f32 %v740_v34, 0.0 }
 0x12e   :  { %v591_v40 = vpop.f32.mrb[5].mxu0  ;;  %v697_v41 = vpop.f32.mrb[5].mxu1 }
 0x12f   :  { %v745_v43 = vmax.f32 %v741_v37, 0.0  ;;  %v706_v44 = vmax.f32 %v589_v38, %v591_v40  ;;  %v710_v45 = vmax.f32 %v695_v39, %v697_v41  ;;  %v593_v46 = vpop.f32.mrb[6].mxu0  ;;  %v699_v47 = vpop.f32.mrb[6].mxu1 }
 0x130   :  { %v595_v48 = vpop.f32.mrb[7].mxu0  ;;  %v701_v49 = vpop.f32.mrb[7].mxu1 }
 0x131   :  { %v865_v50 = vpack.c.bf16 %v745_v43, %v744_v42  ;;  %v714_v51 = vmax.f32 %v706_v44, %v710_v45  ;;  %v707_v52 = vmax.f32 %v593_v46, %v595_v48  ;;  %v711_v53 = vmax.f32 %v699_v47, %v701_v49 }
 0x133   :  { %866 = vst [vmem:[%s1290_s3] sm:$0xff] %v865_v50   ;;  %v742_v54 = vadd.f32 %v733_v36, %v714_v51  ;;  %v715_v55 = vmax.f32 %v707_v52, %v711_v53 }
 0x135   :  { %v743_v57 = vadd.f32 %v738_v56, %v715_v55  ;;  %v746_v58 = vmax.f32 %v742_v54, 0.0 }
 0x137   :  { %v747_v59 = vmax.f32 %v743_v57, 0.0 }
 0x139   :  { %v870_v60 = vpack.c.bf16 %v747_v59, %v746_v58 }
 0x13b   :  { %872 = vst [vmem:[%s1290_s3 + $0x8] sm:$0xff] %v870_v60  }

// kernel: net_forward.6
= control target key start
LH: loop header
LB: loop body
LE: loop exit
PB: predicated region body
PF: predicated region fallthrough
CT: control target
= control target key end

     0   :  { %v969_v1 = vmov 0   ;;  %vm478_vm0 = vcmask 261120   ;;  %s1242_s0 = inlined_call_operand.vmem [shape: bf16[288,512], index: 0, kind: input, shape index: {}]   ;;  %s1243_s1 = inlined_call_operand.vmem [shape: bf16[24,288], index: 1, kind: input, shape index: {}]   ;;  %s1244_s2 = inlined_call_operand.vmem [shape: f32[24,1], index: 2, kind: input, shape index: {}]   ;;  %s1245_s3 = inlined_call_operand.vmem [shape: bf16[24,128], index: 3, kind: output, shape index: {}]  }
   0x1   :  { %v854_v0 = vld [vmem:[%s1242_s0 + $0x4] ss:$16 sps:$4 sm:$0xff]   ;;  %852 = vset.pattern.permute.xlu0 %v969_v1  ;;  %853 = vset.pattern.permute.xlu1 %v969_v1  ;;  %v856_v2 = vld [vmem:[%s1242_s0 + $0xc] ss:$16 sps:$4 sm:$0xff]   ;;  %v858_v3 = vld [vmem:[%s1242_s0] ss:$16 sps:$4 sm:$0xff]  }
   0x2   :  { %485 = vmatprep.subr.bf16.mxu0 %v854_v0  ;;  %v859_v4 = vld [vmem:[%s1242_s0 + $0x8] ss:$16 sps:$4 sm:$0xff]   ;;  %587 = vmatprep.subr.bf16.mxu1 %v856_v2  ;;  %v860_v5 = vld [vmem:[%s1242_s0 + $0x24] ss:$16 sps:$4 sm:$0xff]   ;;  %v862_v6 = vld [vmem:[%s1242_s0 + $0x2c] ss:$16 sps:$4 sm:$0xff]  }
   0x3   :  { %486 = vmatpush1.bf16.msra.mxu0 %v858_v3  ;;  %588 = vmatpush1.bf16.msra.mxu1 %v859_v4  ;;  %v864_v7 = vld [vmem:[%s1242_s0 + $0x20] ss:$16 sps:$4 sm:$0xff]   ;;  %v865_v8 = vld [vmem:[%s1242_s0 + $0x28] ss:$16 sps:$4 sm:$0xff]   ;;  %v866_v9 = vld [vmem:[%s1242_s0 + $0x44] ss:$16 sps:$4 sm:$0xff]  }
   0x4   :  { %487 = vmatprep.subr.bf16.mxu0 %v860_v5  ;;  %589 = vmatprep.subr.bf16.mxu1 %v862_v6  ;;  %v868_v10 = vld [vmem:[%s1242_s0 + $0x4c] ss:$16 sps:$4 sm:$0xff]   ;;  %v870_v11 = vld [vmem:[%s1242_s0 + $0x40] ss:$16 sps:$4 sm:$0xff]   ;;  %v871_v12 = vld [vmem:[%s1242_s0 + $0x48] ss:$16 sps:$4 sm:$0xff]  }
   0x5   :  { %v872_v13 = vld [vmem:[%s1242_s0 + $0x64] ss:$16 sps:$4 sm:$0xff]   ;;  %v874_v14 = vld [vmem:[%s1242_s0 + $0x6c] ss:$16 sps:$4 sm:$0xff]   ;;  %v876_v15 = vld [vmem:[%s1242_s0 + $0x60] ss:$16 sps:$4 sm:$0xff]  }
   0x6   :  { %v877_v16 = vld [vmem:[%s1242_s0 + $0x68] ss:$16 sps:$4 sm:$0xff]   ;;  %v878_v17 = vld [vmem:[%s1242_s0 + $0x84] ss:$16 sps:$4 sm:$0xff]   ;;  %v880_v18 = vld [vmem:[%s1242_s0 + $0x8c] ss:$16 sps:$4 sm:$0xff]  }
   0x7   :  { %488 = vmatpush1.bf16.msra.mxu0 %v864_v7  ;;  %590 = vmatpush1.bf16.msra.mxu1 %v865_v8  ;;  %v882_v19 = vld [vmem:[%s1242_s0 + $0x80] ss:$16 sps:$4 sm:$0xff]   ;;  %v883_v20 = vld [vmem:[%s1242_s0 + $0x88] ss:$16 sps:$4 sm:$0xff]   ;;  %v884_v21 = vld [vmem:[%s1242_s0 + $0xa4] ss:$16 sps:$4 sm:$0xff]  }
   0x8   :  { %489 = vmatprep.subr.bf16.mxu0 %v866_v9  ;;  %591 = vmatprep.subr.bf16.mxu1 %v868_v10  ;;  %v886_v22 = vld [vmem:[%s1242_s0 + $0xac] ss:$16 sps:$4 sm:$0xff]   ;;  %v888_v23 = vld [vmem:[%s1242_s0 + $0xa0] ss:$16 sps:$4 sm:$0xff]   ;;  %v889_v24 = vld [vmem:[%s1242_s0 + $0xa8] ss:$16 sps:$4 sm:$0xff]  }
   0x9   :  { %v890_v25 = vld [vmem:[%s1242_s0 + $0xc4] ss:$16 sps:$4 sm:$0xff]   ;;  %v892_v26 = vld [vmem:[%s1242_s0 + $0xcc] ss:$16 sps:$4 sm:$0xff]   ;;  %v894_v27 = vld [vmem:[%s1242_s0 + $0xc0] ss:$16 sps:$4 sm:$0xff]  }
   0xa   :  { %v895_v28 = vld [vmem:[%s1242_s0 + $0xc8] ss:$16 sps:$4 sm:$0xff]   ;;  %v896_v29 = vld [vmem:[%s1242_s0 + $0xe4] ss:$16 sps:$4 sm:$0xff]   ;;  %v898_v30 = vld [vmem:[%s1242_s0 + $0xec] ss:$16 sps:$4 sm:$0xff]  }
   0xb   :  { %490 = vmatpush1.bf16.msra.mxu0 %v870_v11  ;;  %592 = vmatpush1.bf16.msra.mxu1 %v871_v12  ;;  %v900_v31 = vld [vmem:[%s1242_s0 + $0xe0] ss:$16 sps:$4 sm:$0xff]   ;;  %v901_v32 = vld [vmem:[%s1242_s0 + $0xe8] ss:$16 sps:$4 sm:$0xff]   ;;  %v902_v33 = vld [vmem:[%s1242_s0 + $0x104] ss:$16 sps:$4 sm:$0xff]  }
   0xc   :  { %491 = vmatprep.subr.bf16.mxu0 %v872_v13  ;;  %593 = vmatprep.subr.bf16.mxu1 %v874_v14  ;;  %v904_v34 = vld [vmem:[%s1242_s0 + $0x10c] ss:$16 sps:$4 sm:$0xff]   ;;  %v906_v35 = vld [vmem:[%s1242_s0 + $0x100] ss:$16 sps:$4 sm:$0xff]   ;;  %v907_v36 = vld [vmem:[%s1242_s0 + $0x108] ss:$16 sps:$4 sm:$0xff]  }
   0xd   :  { %v908_v37 = vld [vmem:[%s1242_s0 + $0x124] ss:$16 sps:$4 sm:$0xff]   ;;  %v910_v38 = vld [vmem:[%s1242_s0 + $0x12c] ss:$16 sps:$4 sm:$0xff]   ;;  %v912_v39 = vld [vmem:[%s1242_s0 + $0x120] ss:$16 sps:$4 sm:$0xff]  }
   0xe   :  { %v913_v40 = vld [vmem:[%s1242_s0 + $0x128] ss:$16 sps:$4 sm:$0xff]   ;;  %v914_v41 = vld [vmem:[%s1242_s0 + $0x144] ss:$16 sps:$4 sm:$0xff]   ;;  %v916_v42 = vld [vmem:[%s1242_s0 + $0x14c] ss:$16 sps:$4 sm:$0xff]  }
   0xf   :  { %492 = vmatpush1.bf16.msra.mxu0 %v876_v15  ;;  %594 = vmatpush1.bf16.msra.mxu1 %v877_v16  ;;  %v918_v43 = vld [vmem:[%s1242_s0 + $0x140] ss:$16 sps:$4 sm:$0xff]   ;;  %v919_v44 = vld [vmem:[%s1242_s0 + $0x148] ss:$16 sps:$4 sm:$0xff]   ;;  %v920_v45 = vld [vmem:[%s1242_s0 + $0x164] ss:$16 sps:$4 sm:$0xff]  }
  0x10   :  { %493 = vmatprep.subr.bf16.mxu0 %v878_v17  ;;  %595 = vmatprep.subr.bf16.mxu1 %v880_v18  ;;  %v922_v46 = vld [vmem:[%s1242_s0 + $0x16c] ss:$16 sps:$4 sm:$0xff]   ;;  %v924_v47 = vld [vmem:[%s1242_s0 + $0x160] ss:$16 sps:$4 sm:$0xff]   ;;  %v925_v48 = vld [vmem:[%s1242_s0 + $0x168] ss:$16 sps:$4 sm:$0xff]  }
  0x11   :  { %v952_v49 = vld [vmem:[%s1243_s1 + $0x4] ss:$12 sps:$4 sm:$0xff]   ;;  %v928_v51 = vld [vmem:[%s1242_s0 + $0x18c] ss:$16 sps:$4 sm:$0xff]   ;;  %v931_v53 = vld [vmem:[%s1242_s0 + $0x188] ss:$16 sps:$4 sm:$0xff]  }
  0x12   :  { %v926_v50 = vld [vmem:[%s1242_s0 + $0x184] ss:$16 sps:$4 sm:$0xff]   ;;  %517 = vmatprep.mubr.bf16.mxu0 %v952_v49  ;;  %619 = vmatprep.mubr.bf16.mxu1 %v952_v49  ;;  %v930_v52 = vld [vmem:[%s1242_s0 + $0x180] ss:$16 sps:$4 sm:$0xff]   ;;  %v934_v55 = vld [vmem:[%s1242_s0 + $0x1ac] ss:$16 sps:$4 sm:$0xff]  }
  0x13   :  { %494 = vmatpush1.bf16.msra.mxu0 %v882_v19  ;;  %596 = vmatpush1.bf16.msra.mxu1 %v883_v20  ;;  %v932_v54 = vld [vmem:[%s1242_s0 + $0x1a4] ss:$16 sps:$4 sm:$0xff]   ;;  %v936_v57 = vld [vmem:[%s1242_s0 + $0x1a0] ss:$16 sps:$4 sm:$0xff]   ;;  %v937_v58 = vld [vmem:[%s1242_s0 + $0x1a8] ss:$16 sps:$4 sm:$0xff]  }
  0x14   :  { %495 = vmatprep.subr.bf16.mxu0 %v884_v21  ;;  %597 = vmatprep.subr.bf16.mxu1 %v886_v22  ;;  %v698_v56 = vld [vmem:[%s1244_s2] sm:$0xff]  ;;  %v700_v59 = vld [vmem:[%s1244_s2 + $0x10] sm:$0xff]  ;;  %v940_v61 = vld [vmem:[%s1242_s0 + $0x1cc] ss:$16 sps:$4 sm:$0xff]  }
  0x15   :  { %v938_v60 = vld [vmem:[%s1242_s0 + $0x1c4] ss:$16 sps:$4 sm:$0xff]   ;;  %703 = vperm.xlu0 %852, %v698_v56   ;;  %713 = vperm.xlu1 %853, %v700_v59   ;;  %v699_v62 = vld [vmem:[%s1244_s2 + $0x8] sm:$0xff]  ;;  %v942_v63 = vld [vmem:[%s1242_s0 + $0x1c0] ss:$16 sps:$4 sm:$0xff]  }
  0x16   :  { %v943_v0 = vld [vmem:[%s1242_s0 + $0x1c8] ss:$16 sps:$4 sm:$0xff]   ;;  %v944_v2 = vld [vmem:[%s1242_s0 + $0x1e4] ss:$16 sps:$4 sm:$0xff]   ;;  %v946_v3 = vld [vmem:[%s1242_s0 + $0x1ec] ss:$16 sps:$4 sm:$0xff]  }
  0x17   :  { %496 = vmatpush1.bf16.msra.mxu0 %v888_v23  ;;  %598 = vmatpush1.bf16.msra.mxu1 %v889_v24  ;;  %v948_v4 = vld [vmem:[%s1242_s0 + $0x1e0] ss:$16 sps:$4 sm:$0xff]   ;;  %v949_v5 = vld [vmem:[%s1242_s0 + $0x1e8] ss:$16 sps:$4 sm:$0xff]   ;;  %v955_v6 = vld [vmem:[%s1242_s0 + $0x204] ss:$16 sps:$4 sm:$0xff]  }
  0x18   :  { %497 = vmatprep.subr.bf16.mxu0 %v890_v25  ;;  %599 = vmatprep.subr.bf16.mxu1 %v892_v26  ;;  %v958_v7 = vld [vmem:[%s1242_s0 + $0x20c] ss:$16 sps:$4 sm:$0xff]   ;;  %v953_v10 = vld [vmem:[%s1242_s0 + $0x200] ss:$16 sps:$4 sm:$0xff]   ;;  %v956_v11 = vld [vmem:[%s1242_s0 + $0x208] ss:$16 sps:$4 sm:$0xff]  }
  0x19   :  { %708 = vperm.xlu0 %852, %v699_v62   ;;  %v19_v8 = vld [vmem:[%s1243_s1 + $0x18] sm:$0xff]  ;;  %v950_v9 = vld [vmem:[%s1243_s1] ss:$12 sps:$4 sm:$0xff]   ;;  %v963_v13 = vld [vmem:[%s1242_s0 + $0x224] ss:$16 sps:$4 sm:$0xff]  }
  0x1a   :  { %v746_v12 = vcombine.high %v19_v8, %v19_v8  ;;  %v966_v14 = vld [vmem:[%s1242_s0 + $0x22c] ss:$16 sps:$4 sm:$0xff]   ;;  %v961_v15 = vld [vmem:[%s1242_s0 + $0x220] ss:$16 sps:$4 sm:$0xff]   ;;  %v964_v16 = vld [vmem:[%s1242_s0 + $0x228] ss:$16 sps:$4 sm:$0xff]   ;;  %v745_v17 = vcombine.low %v19_v8, %v19_v8 }
  0x1b   :  { %498 = vmatpush1.bf16.msra.mxu0 %v894_v27  ;;  %600 = vmatpush1.bf16.msra.mxu1 %v895_v28  ;;  %v967_v18 = vld [vmem:[%s1243_s1 + $0x8] ss:$12 sps:$4 sm:$0xff]   ;;  %v968_v19 = vld [vmem:[%s1243_s1 + $0x20] ss:$0 sps:$4 sm:$0xff]  }
  0x1c   :  { %499 = vmatprep.subr.bf16.mxu0 %v896_v29  ;;  %601 = vmatprep.subr.bf16.mxu1 %v898_v30 }
  0x1f   :  { %500 = vmatpush1.bf16.msra.mxu0 %v900_v31  ;;  %602 = vmatpush1.bf16.msra.mxu1 %v901_v32 }
  0x20   :  { %501 = vmatprep.subr.bf16.mxu0 %v902_v33  ;;  %603 = vmatprep.subr.bf16.mxu1 %v904_v34 }
  0x23   :  { %502 = vmatpush1.bf16.msra.mxu0 %v906_v35  ;;  %604 = vmatpush1.bf16.msra.mxu1 %v907_v36 }
  0x24   :  { %503 = vmatprep.subr.bf16.mxu0 %v908_v37  ;;  %605 = vmatprep.subr.bf16.mxu1 %v910_v38 }
  0x27   :  { %504 = vmatpush1.bf16.msra.mxu0 %v912_v39  ;;  %606 = vmatpush1.bf16.msra.mxu1 %v913_v40 }
  0x28   :  { %505 = vmatprep.subr.bf16.mxu0 %v914_v41  ;;  %607 = vmatprep.subr.bf16.mxu1 %v916_v42 }
  0x2b   :  { %506 = vmatpush1.bf16.msra.mxu0 %v918_v43  ;;  %608 = vmatpush1.bf16.msra.mxu1 %v919_v44 }
  0x2c   :  { %507 = vmatprep.subr.bf16.mxu0 %v920_v45  ;;  %609 = vmatprep.subr.bf16.mxu1 %v922_v46 }
  0x2f   :  { %508 = vmatpush1.bf16.msra.mxu0 %v924_v47  ;;  %610 = vmatpush1.bf16.msra.mxu1 %v925_v48 }
  0x30   :  { %509 = vmatprep.subr.bf16.mxu0 %v926_v50  ;;  %611 = vmatprep.subr.bf16.mxu1 %v928_v51 }
  0x33   :  { %510 = vmatpush1.bf16.msra.mxu0 %v930_v52  ;;  %612 = vmatpush1.bf16.msra.mxu1 %v931_v53 }
  0x34   :  { %511 = vmatprep.subr.bf16.mxu0 %v932_v54  ;;  %613 = vmatprep.subr.bf16.mxu1 %v934_v55 }
  0x37   :  { %512 = vmatpush1.bf16.msra.mxu0 %v936_v57  ;;  %614 = vmatpush1.bf16.msra.mxu1 %v937_v58 }
  0x38   :  { %513 = vmatprep.subr.bf16.mxu0 %v938_v60  ;;  %615 = vmatprep.subr.bf16.mxu1 %v940_v61 }
  0x3b   :  { %514 = vmatpush1.bf16.msra.mxu0 %v942_v63  ;;  %616 = vmatpush1.bf16.msra.mxu1 %v943_v0 }
  0x3c   :  { %515 = vmatprep.subr.bf16.mxu0 %v944_v2  ;;  %617 = vmatprep.subr.bf16.mxu1 %v946_v3 }
  0x3f   :  { %516 = vmatpush1.bf16.msra.mxu0 %v948_v4  ;;  %618 = vmatpush1.bf16.msra.mxu1 %v949_v5 }
  0x40   :  { %536 = vmatprep.subr.bf16.mxu0 %v955_v6  ;;  %638 = vmatprep.subr.bf16.mxu1 %v958_v7 }
  0x42   :  { %518 = vmatmul.mubr.bf16.vlgmr.msra.gmra.mrb[0].mxu0 %v950_v9  ;;  %620 = vmatmul.mubr.bf16.vlgmr.msra.gmra.mrb[0].mxu1 %v950_v9 }
  0x43   :  { %537 = vmatpush1.bf16.msra.mxu0 %v953_v10  ;;  %639 = vmatpush1.bf16.msra.mxu1 %v956_v11 }
  0x44   :  { %527 = vmatprep.mubr.bf16.mxu0 %v746_v12  ;;  %629 = vmatprep.mubr.bf16.mxu1 %v746_v12 }
  0x45   :  { %538 = vmatprep.subr.bf16.mxu0 %v963_v13  ;;  %640 = vmatprep.subr.bf16.mxu1 %v966_v14 }
  0x47   :  { %539 = vmatpush1.bf16.msra.mxu0 %v961_v15  ;;  %641 = vmatpush1.bf16.msra.mxu1 %v964_v16 }
  0x4a   :  { %528 = vmatmul.mubr.bf16.gmra.mrb[4].mxu0 %v745_v17  ;;  %630 = vmatmul.mubr.bf16.gmra.mrb[4].mxu1 %v745_v17 }
  0x4b   :  { %568 = vmatprep.mubr.bf16.mxu0 %v969_v1  ;;  %670 = vmatprep.mubr.bf16.mxu1 %v969_v1 }
  0x52   :  { %820 = vmatmul.mubr.msk.bf16.vlgmr.msra.gmra.mrb[0].mxu0 %vm478_vm0, %v967_v18  ;;  %822 = vmatmul.mubr.msk.bf16.vlgmr.msra.gmra.mrb[0].mxu1 %vm478_vm0, %v967_v18 }
  0x53   :  { %578 = vmatprep.mubr.bf16.mxu0 %v969_v1  ;;  %680 = vmatprep.mubr.bf16.mxu1 %v969_v1 }
  0x5a   :  { %821 = vmatmul.mubr.msk.bf16.gmra.mrb[4].mxu0 %vm478_vm0, %v968_v19  ;;  %823 = vmatmul.mubr.msk.bf16.gmra.mrb[4].mxu1 %vm478_vm0, %v968_v19 }
  0x94   :  { %v704_v20 = vpop.permute.xlu0 %703  ;;  %v714_v36 = vpop.permute.xlu1 %713 }
  0x98   :  { %v709_v33 = vpop.permute.xlu0 %708 }
 0x125   :  { %v570_v21 = vpop.f32.mrb[0].mxu0  ;;  %v672_v22 = vpop.f32.mrb[0].mxu1 }
 0x126   :  { %v572_v23 = vpop.f32.mrb[1].mxu0  ;;  %v674_v24 = vpop.f32.mrb[1].mxu1 }
 0x127   :  { %v689_v25 = vmax.f32 %v570_v21, %v572_v23  ;;  %v692_v26 = vmax.f32 %v672_v22, %v674_v24  ;;  %v574_v27 = vpop.f32.mrb[2].mxu0  ;;  %v676_v28 = vpop.f32.mrb[2].mxu1 }
 0x128   :  { %v576_v29 = vpop.f32.mrb[3].mxu0  ;;  %v678_v30 = vpop.f32.mrb[3].mxu1 }
 0x129   :  { %v695_v31 = vmax.f32 %v689_v25, %v692_v26  ;;  %v690_v32 = vmax.f32 %v574_v27, %v576_v29  ;;  %v693_v1 = vmax.f32 %v676_v28, %v678_v30 }
 0x12b   :  { %v716_v34 = vadd.f32 %v704_v20, %v695_v31  ;;  %v696_v35 = vmax.f32 %v690_v32, %v693_v1 }
 0x12d   :  { %v717_v37 = vadd.f32 %v709_v33, %v696_v35  ;;  %v580_v38 = vpop.f32.mrb[4].mxu0  ;;  %v682_v39 = vpop.f32.mrb[4].mxu1  ;;  %v719_v42 = vmax.f32 %v716_v34, 0.0 }
 0x12e   :  { %v582_v40 = vpop.f32.mrb[5].mxu0  ;;  %v684_v41 = vpop.f32.mrb[5].mxu1 }
 0x12f   :  { %v720_v43 = vmax.f32 %v717_v37, 0.0  ;;  %v691_v44 = vmax.f32 %v580_v38, %v582_v40  ;;  %v694_v45 = vmax.f32 %v682_v39, %v684_v41  ;;  %v584_v46 = vpop.f32.mrb[6].mxu0  ;;  %v686_v47 = vpop.f32.mrb[6].mxu1 }
 0x130   :  { %v585_v48 = vpop.f32.mrb[7].mxu0  ;;  %v687_v49 = vpop.f32.mrb[7].mxu1 }
 0x131   :  { %v833_v50 = vpack.c.bf16 %v720_v43, %v719_v42  ;;  %v697_v51 = vmax.f32 %v691_v44, %v694_v45 }
 0x133   :  { %v718_v52 = vadd.f32 %v714_v36, %v697_v51  ;;  %834 = vst [vmem:[%s1245_s3] sm:$0xff] %v833_v50  }
 0x135   :  { %v721_v53 = vmax.f32 %v718_v52, 0.0 }
 0x137   :  { %v829_v54 = vpack.c.bf16 %v721_v53, %v721_v53 }
 0x139   :  { %737 = vst [vmem:[%s1245_s3 + $0x8] sm:$0xf] %v829_v54 }

// kernel: net_forward.7
= control target key start
LH: loop header
LB: loop body
LE: loop exit
PB: predicated region body
PF: predicated region fallthrough
CT: control target
= control target key end

     0   :  { %v815_v1 = vmov 0   ;;  %vm188_vm0 = vcmask 785408   ;;  %v48_v58 = vlaneseq  ;;  %s1026_s1 = inlined_call_operand.vmem [shape: bf16[96,512], index: 1, kind: input, shape index: {}]   ;;  %s1027_s3 = inlined_call_operand.vmem [shape: bf16[512,128], index: 3, kind: input, shape index: {}]   ;;  %s1028_s0 = inlined_call_operand.vmem [shape: bf16[8,96], index: 0, kind: input, shape index: {}]   ;;  %s1029_s2 = inlined_call_operand.vmem [shape: f32[1,512], index: 2, kind: input, shape index: {}]   ;;  %s1030_s4 = inlined_call_operand.vmem [shape: f32[1,128], index: 4, kind: input, shape index: {}]   ;;  %s1031_s5 = inlined_call_operand.vmem [shape: f32[8,128], index: 5, kind: output, shape index: {}]  }
   0x1   :  { %v743_v0 = vld [vmem:[%s1026_s1 + $0x4] ss:$16 sps:$4 sm:$0xff]   ;;  %224 = vmatprep.mubr.bf16.mxu0 %v815_v1  ;;  %265 = vmatprep.mubr.bf16.mxu1 %v815_v1  ;;  %v745_v2 = vld [vmem:[%s1026_s1 + $0xc] ss:$16 sps:$4 sm:$0xff]   ;;  %v747_v3 = vld [vmem:[%s1026_s1] ss:$16 sps:$4 sm:$0xff]  }
   0x2   :  { %192 = vmatprep.subr.bf16.mxu0 %v743_v0  ;;  %v748_v4 = vld [vmem:[%s1026_s1 + $0x8] ss:$16 sps:$4 sm:$0xff]   ;;  %233 = vmatprep.subr.bf16.mxu1 %v745_v2  ;;  %v749_v5 = vld [vmem:[%s1026_s1 + $0x24] ss:$16 sps:$4 sm:$0xff]   ;;  %v751_v6 = vld [vmem:[%s1026_s1 + $0x2c] ss:$16 sps:$4 sm:$0xff]  }
   0x3   :  { %193 = vmatpush1.bf16.msra.mxu0 %v747_v3  ;;  %234 = vmatpush1.bf16.msra.mxu1 %v748_v4  ;;  %v753_v7 = vld [vmem:[%s1026_s1 + $0x20] ss:$16 sps:$4 sm:$0xff]   ;;  %v754_v8 = vld [vmem:[%s1026_s1 + $0x28] ss:$16 sps:$4 sm:$0xff]   ;;  %v755_v9 = vld [vmem:[%s1026_s1 + $0x44] ss:$16 sps:$4 sm:$0xff]  }
   0x4   :  { %194 = vmatprep.subr.bf16.mxu0 %v749_v5  ;;  %235 = vmatprep.subr.bf16.mxu1 %v751_v6  ;;  %v757_v10 = vld [vmem:[%s1026_s1 + $0x4c] ss:$16 sps:$4 sm:$0xff]   ;;  %v759_v11 = vld [vmem:[%s1026_s1 + $0x40] ss:$16 sps:$4 sm:$0xff]   ;;  %v760_v12 = vld [vmem:[%s1026_s1 + $0x48] ss:$16 sps:$4 sm:$0xff]  }
   0x5   :  { %v761_v13 = vld [vmem:[%s1026_s1 + $0x64] ss:$16 sps:$4 sm:$0xff]   ;;  %v763_v14 = vld [vmem:[%s1026_s1 + $0x6c] ss:$16 sps:$4 sm:$0xff]   ;;  %v765_v15 = vld [vmem:[%s1026_s1 + $0x60] ss:$16 sps:$4 sm:$0xff]  }
   0x6   :  { %v766_v16 = vld [vmem:[%s1026_s1 + $0x68] ss:$16 sps:$4 sm:$0xff]   ;;  %v767_v17 = vld [vmem:[%s1026_s1 + $0x84] ss:$16 sps:$4 sm:$0xff]   ;;  %v769_v18 = vld [vmem:[%s1026_s1 + $0x8c] ss:$16 sps:$4 sm:$0xff]  }
   0x7   :  { %195 = vmatpush1.bf16.msra.mxu0 %v753_v7  ;;  %236 = vmatpush1.bf16.msra.mxu1 %v754_v8  ;;  %v771_v19 = vld [vmem:[%s1026_s1 + $0x80] ss:$16 sps:$4 sm:$0xff]   ;;  %v772_v20 = vld [vmem:[%s1026_s1 + $0x88] ss:$16 sps:$4 sm:$0xff]   ;;  %v773_v21 = vld [vmem:[%s1026_s1 + $0xa4] ss:$16 sps:$4 sm:$0xff]  }
   0x8   :  { %196 = vmatprep.subr.bf16.mxu0 %v755_v9  ;;  %237 = vmatprep.subr.bf16.mxu1 %v757_v10  ;;  %v775_v22 = vld [vmem:[%s1026_s1 + $0xac] ss:$16 sps:$4 sm:$0xff]   ;;  %v777_v23 = vld [vmem:[%s1026_s1 + $0xa0] ss:$16 sps:$4 sm:$0xff]   ;;  %v778_v24 = vld [vmem:[%s1026_s1 + $0xa8] ss:$16 sps:$4 sm:$0xff]  }
   0x9   :  { %v779_v25 = vld [vmem:[%s1027_s3 + $0x40] sm:$0xff]   ;;  %v783_v30 = vld [vmem:[%s1027_s3 + $0x48] sm:$0xff]   ;;  %v787_v34 = vld [vmem:[%s1027_s3 + $0x50] sm:$0xff]   ;;  %v49_v59 = vshrl.u32 %v48_v58, 7 }
   0xa   :  { %v780_v26 = vld [vmem:[%s1027_s3 + $0xc0] sm:$0xff]   ;;  %v784_v31 = vld [vmem:[%s1027_s3 + $0xc8] sm:$0xff]   ;;  %v788_v35 = vld [vmem:[%s1027_s3 + $0xd0] sm:$0xff]  }
   0xb   :  { %197 = vmatpush1.bf16.msra.mxu0 %v759_v11  ;;  %238 = vmatpush1.bf16.msra.mxu1 %v760_v12  ;;  %v21_v27 = vld [vmem:[%s1028_s0] sm:$0xf]  ;;  %v785_v32 = vld [vmem:[%s1027_s3 + $0x8] sm:$0xff]   ;;  %v789_v36 = vld [vmem:[%s1027_s3 + $0x10] sm:$0xff]   ;;  %v50_v60 = vsub.s32 0, %v49_v59  ;;  %v58_v61 = vsub.s32 2, %v49_v59 }
   0xc   :  { %198 = vmatprep.subr.bf16.mxu0 %v761_v13  ;;  %239 = vmatprep.subr.bf16.mxu1 %v763_v14  ;;  %v781_v28 = vld [vmem:[%s1027_s3] sm:$0xff]   ;;  %v786_v33 = vld [vmem:[%s1027_s3 + $0x88] sm:$0xff]   ;;  %v790_v37 = vld [vmem:[%s1027_s3 + $0x90] sm:$0xff]   ;;  %v54_v63 = vsub.s32 1, %v49_v59  ;;  %v62_v0 = vsub.s32 3, %v49_v59 }
   0xd   :  { %v782_v29 = vld [vmem:[%s1027_s3 + $0x80] sm:$0xff]   ;;  %v791_v38 = vld [vmem:[%s1027_s3 + $0x58] sm:$0xff]   ;;  %v799_v46 = vld [vmem:[%s1027_s3 + $0x68] sm:$0xff]  }
   0xe   :  { %v792_v39 = vld [vmem:[%s1027_s3 + $0xd8] sm:$0xff]   ;;  %v795_v42 = vld [vmem:[%s1027_s3 + $0x60] sm:$0xff]   ;;  %v800_v47 = vld [vmem:[%s1027_s3 + $0xe8] sm:$0xff]  }
   0xf   :  { %199 = vmatpush1.bf16.msra.mxu0 %v765_v15  ;;  %240 = vmatpush1.bf16.msra.mxu1 %v766_v16  ;;  %v793_v40 = vld [vmem:[%s1027_s3 + $0x18] sm:$0xff]   ;;  %v796_v43 = vld [vmem:[%s1027_s3 + $0xe0] sm:$0xff]   ;;  %v801_v48 = vld [vmem:[%s1027_s3 + $0x28] sm:$0xff]  }
  0x10   :  { %200 = vmatprep.subr.bf16.mxu0 %v767_v17  ;;  %241 = vmatprep.subr.bf16.mxu1 %v769_v18  ;;  %v794_v41 = vld [vmem:[%s1027_s3 + $0x98] sm:$0xff]   ;;  %v797_v44 = vld [vmem:[%s1027_s3 + $0x20] sm:$0xff]   ;;  %v802_v49 = vld [vmem:[%s1027_s3 + $0xa8] sm:$0xff]  }
  0x11   :  { %v798_v45 = vld [vmem:[%s1027_s3 + $0xa0] sm:$0xff]   ;;  %v803_v50 = vld [vmem:[%s1027_s3 + $0x70] sm:$0xff]   ;;  %v807_v54 = vld [vmem:[%s1027_s3 + $0x78] sm:$0xff]  }
  0x12   :  { %v804_v51 = vld [vmem:[%s1027_s3 + $0xf0] sm:$0xff]   ;;  %v808_v55 = vld [vmem:[%s1027_s3 + $0xf8] sm:$0xff]   ;;  %v46_v62 = vld [vmem:[%s1029_s2] sm:$0xf] }
  0x13   :  { %201 = vmatpush1.bf16.msra.mxu0 %v771_v19  ;;  %242 = vmatpush1.bf16.msra.mxu1 %v772_v20  ;;  %v805_v52 = vld [vmem:[%s1027_s3 + $0x30] sm:$0xff]   ;;  %v809_v56 = vld [vmem:[%s1027_s3 + $0x38] sm:$0xff]   ;;  %v51_v1 = vrot.slane %v46_v62, %v50_v60  ;;  %v59_v2 = vrot.slane %v46_v62, %v58_v61  ;;  %v55_v3 = vrot.slane %v46_v62, %v54_v63 }
  0x14   :  { %202 = vmatprep.subr.bf16.mxu0 %v773_v21  ;;  %243 = vmatprep.subr.bf16.mxu1 %v775_v22  ;;  %v806_v53 = vld [vmem:[%s1027_s3 + $0xb0] sm:$0xff]   ;;  %v810_v57 = vld [vmem:[%s1027_s3 + $0xb8] sm:$0xff]   ;;  %v63_v4 = vrot.slane %v46_v62, %v62_v0 }
  0x17   :  { %203 = vmatpush1.bf16.msra.mxu0 %v777_v23  ;;  %244 = vmatpush1.bf16.msra.mxu1 %v778_v24 }
  0x18   :  { %698 = vmatprep.subr.bf16.mxu0 %v779_v25  ;;  %720 = vmatprep.subr.bf16.mxu1 %v780_v26 }
  0x1a   :  { %663 = vmatmul.mubr.msk.bf16.vlgmr.msra.gmra.mrb[0].mxu0 %vm188_vm0, %v21_v27  ;;  %664 = vmatmul.mubr.msk.bf16.vlgmr.msra.gmra.mrb[0].mxu1 %vm188_vm0, %v21_v27  ;;  %v665_v27 = vld [vmem:[%s1030_s4] ss:$0 sm:$0xff] }
  0x1b   :  { %699 = vmatpush3.bf16.msra.mxu0 %v781_v28  ;;  %721 = vmatpush3.bf16.msra.mxu1 %v782_v29 }
  0x1c   :  { %700 = vmatprep.subr.bf16.mxu0 %v783_v30  ;;  %722 = vmatprep.subr.bf16.mxu1 %v784_v31 }
  0x1f   :  { %701 = vmatpush3.bf16.msra.mxu0 %v785_v32  ;;  %723 = vmatpush3.bf16.msra.mxu1 %v786_v33 }
  0x20   :  { %702 = vmatprep.subr.bf16.mxu0 %v787_v34  ;;  %724 = vmatprep.subr.bf16.mxu1 %v788_v35 }
  0x23   :  { %703 = vmatpush3.bf16.msra.mxu0 %v789_v36  ;;  %725 = vmatpush3.bf16.msra.mxu1 %v790_v37 }
  0x24   :  { %704 = vmatprep.subr.bf16.mxu0 %v791_v38  ;;  %726 = vmatprep.subr.bf16.mxu1 %v792_v39 }
  0x27   :  { %705 = vmatpush3.bf16.msra.mxu0 %v793_v40  ;;  %727 = vmatpush3.bf16.msra.mxu1 %v794_v41 }
  0x28   :  { %706 = vmatprep.subr.bf16.mxu0 %v795_v42  ;;  %728 = vmatprep.subr.bf16.mxu1 %v796_v43 }
  0x2b   :  { %707 = vmatpush3.bf16.msra.mxu0 %v797_v44  ;;  %729 = vmatpush3.bf16.msra.mxu1 %v798_v45 }
  0x2c   :  { %708 = vmatprep.subr.bf16.mxu0 %v799_v46  ;;  %730 = vmatprep.subr.bf16.mxu1 %v800_v47 }
  0x2f   :  { %709 = vmatpush3.bf16.msra.mxu0 %v801_v48  ;;  %731 = vmatpush3.bf16.msra.mxu1 %v802_v49 }
  0x30   :  { %710 = vmatprep.subr.bf16.mxu0 %v803_v50  ;;  %732 = vmatprep.subr.bf16.mxu1 %v804_v51 }
  0x33   :  { %711 = vmatpush3.bf16.msra.mxu0 %v805_v52  ;;  %733 = vmatpush3.bf16.msra.mxu1 %v806_v53 }
  0x34   :  { %712 = vmatprep.subr.bf16.mxu0 %v807_v54  ;;  %734 = vmatprep.subr.bf16.mxu1 %v808_v55 }
  0x37   :  { %713 = vmatpush3.bf16.msra.mxu0 %v809_v56  ;;  %735 = vmatpush3.bf16.msra.mxu1 %v810_v57 }
  0xed   :  { %v226_v5 = vpop.f32.mrb[0].mxu0  ;;  %v267_v6 = vpop.f32.mrb[0].mxu1 }
  0xee   :  { %v227_v7 = vadd.f32 %v226_v5, %v51_v1  ;;  %v268_v8 = vadd.f32 %v267_v6, %v59_v2  ;;  %v228_v9 = vpop.f32.mrb[1].mxu0  ;;  %v269_v10 = vpop.f32.mrb[1].mxu1 }
  0xef   :  { %v229_v11 = vadd.f32 %v228_v9, %v55_v3  ;;  %v270_v12 = vadd.f32 %v269_v10, %v63_v4  ;;  %v230_v13 = vpop.f32.mrb[2].mxu0  ;;  %v271_v14 = vpop.f32.mrb[2].mxu1 }
  0xf0   :  { %v274_v15 = vmax.f32 %v227_v7, 0.0  ;;  %v276_v16 = vmax.f32 %v268_v8, 0.0  ;;  %v231_v17 = vpop.f32.mrb[3].mxu0  ;;  %v272_v18 = vpop.f32.mrb[3].mxu1 }
  0xf1   :  { %v275_v19 = vmax.f32 %v229_v11, 0.0  ;;  %v277_v20 = vmax.f32 %v270_v12, 0.0 }
  0xf2   :  { %v280_v21 = vpack.c.bf16 %v276_v16, %v276_v16  ;;  %v278_v24 = vpack.c.bf16 %v274_v15, %v274_v15 }
  0xf3   :  { %v279_v22 = vpack.c.bf16 %v275_v19, %v275_v19  ;;  %v281_v23 = vpack.c.bf16 %v277_v20, %v277_v20 }
  0xf5   :  { %577 = vmatprep.mubr.bf16.mxu0 %v279_v22  ;;  %617 = vmatprep.mubr.bf16.mxu1 %v281_v23 }
  0xf6   :  { %578 = vmatmul.mubr.bf16.vlgmr.msra.gmra.mrb[4].mxu0 %v278_v24  ;;  %618 = vmatmul.mubr.bf16.vlgmr.msra.gmra.mrb[4].mxu1 %v280_v21 }
 0x1c9   :  { %v714_v25 = vpop.f32.mrb[4].mxu0  ;;  %v736_v26 = vpop.f32.mrb[4].mxu1 }
 0x1ca   :  { %v715_v28 = vpop.f32.mrb[5].mxu0  ;;  %v737_v29 = vpop.f32.mrb[5].mxu1 }
 0x1cb   :  { %v716_v30 = vadd.f32 %v715_v28, %v714_v25  ;;  %v738_v31 = vadd.f32 %v737_v29, %v736_v26  ;;  %v717_v32 = vpop.f32.mrb[6].mxu0  ;;  %v739_v33 = vpop.f32.mrb[6].mxu1 }
 0x1cc   :  { %v718_v34 = vpop.f32.mrb[7].mxu0  ;;  %v740_v35 = vpop.f32.mrb[7].mxu1 }
 0x1cd   :  { %v580_v36 = vadd.f32 %v716_v30, %v665_v27 }
 0x1cf   :  { %v620_v37 = vadd.f32 %v738_v31, %v580_v36 }
 0x1d1   :  { %625 = vmax.xlane.f32.xlu0 %v620_v37 }
 0x25e   :  { %v626_v38 = vpop.xlane.xlu0 %625 }
 0x25f   :  { %v627_v39 = vsub.f32 %v620_v37, %v626_v38 }
 0x261   :  { %v628_v40 = vmul.f32 1.442695, %v627_v39 }
 0x263   :  { %811 = vpow2.f32 %v628_v40 }
 0x26d   :  { %v812_v41 = vpop.eup %811 }
 0x26e   :  { %630 = vadd.xlane.f32.xlu0 %v812_v41 }
 0x2fb   :  { %v631_v42 = vpop.xlane.xlu0 %630 }
 0x2fc   :  { %813 = vrcp.f32 %v631_v42 }
 0x306   :  { %v814_v43 = vpop.eup %813 }
 0x307   :  { %v633_v44 = vmul.f32 %v814_v43, %v812_v41 }
 0x309   :  { %634 = vst [vmem:[%s1031_s5] sm:$0xff] %v633_v44 }

</bundles_post_ra>
